<compile_context>
chip_gen: v6e
topology: v6e:2x2x1
jax: 0.10.0
libtpu: 0.0.40
codegen_flags: <defaults>
</compile_context>

<pallas_src>
import functools

import jax
import jax.numpy as jnp
from jax import lax
from jax.experimental import pallas as pl
from jax.experimental.pallas import tpu as pltpu

EPS = 1e-5
SQRT1_2 = 0.7071067811865476

_ERF_P = 0.3275911
_ERF_A = (0.254829592, -0.284496736, 1.421413741, -1.453152027, 1.061405429)


def _erf(v):
    # A&S 7.1.26 rational approximation, |err| <= 1.5e-7; only exp / VPU ops.
    a1, a2, a3, a4, a5 = _ERF_A
    av = jnp.abs(v)
    t = 1.0 / (1.0 + _ERF_P * av)
    poly = ((((a5 * t + a4) * t + a3) * t + a2) * t + a1) * t
    e = poly * jnp.exp(-(av * av))
    return jnp.where(v < 0.0, e - 1.0, 1.0 - e)


def _gelu(v):
    # exact (erf-form) GELU, matching nn.GELU() default
    return 0.5 * v * (1.0 + _erf(v * SQRT1_2))


def _unet_up_kernel(x_ref, s_ref, wtx_ref, wts_ref, wnb_ref, vecs_ref, out_ref,
                    *, seq_len):
    R, C2 = out_ref.shape          # R = NB * L rows, C2 = 2 * Cout lanes
    C = C2 // 2

    vecs = vecs_ref[...]           # (9, 2C) packed per-channel params
    bias = vecs[0:1, :]            # ConvT bias, [even | odd]

    # hoisted boundary / phase masks, shared by all 4 conv layers
    row = lax.broadcasted_iota(jnp.int32, (R, C2), 0)
    lane = lax.broadcasted_iota(jnp.int32, (R, C2), 1)
    pos = row % seq_len            # position l within each batch element
    not_first = pos != 0           # zero-pad mask for h[2l-1]
    not_last = pos != seq_len - 1  # zero-pad mask for h[2l+2]
    even_half = lane < C

    # ConvTranspose1d(k=2, s=2): both polyphases of all NB*L rows in 2 matmuls.
    #   lanes [:C]  = h[2l]    (even phase)
    #   lanes [C:]  = h[2l+1]  (odd phase)
    ab = (jnp.dot(x_ref[...], wtx_ref[...], preferred_element_type=jnp.float32)
          + jnp.dot(s_ref[...], wts_ref[...], preferred_element_type=jnp.float32)
          + bias)                  # (R, 2C)

    # 4 x (Conv1d(k=3, pad=1) -> folded BN -> GELU); 2 matmuls per layer, no concats.
    for layer in range(4):
        sc = vecs[1 + layer:2 + layer, :]        # (1, 2C) folded BN scale
        sh = vecs[5 + layer:6 + layer, :]        # (1, 2C) folded BN shift (+conv bias)

        # neighbour taps via sublane rolls + boundary masks + one lane select.
        prev = jnp.where(not_first, pltpu.roll(ab, 1, axis=0), 0.0)     # rows shifted +1
        nxt = jnp.where(not_last, pltpu.roll(ab, R - 1, axis=0), 0.0)   # rows shifted -1
        nbr = jnp.where(even_half, nxt, prev)    # lanes: [h[2l+2] | h[2l-1]]

        pre = (jnp.dot(ab, wnb_ref[layer], preferred_element_type=jnp.float32)
               + jnp.dot(nbr, wnb_ref[4 + layer], preferred_element_type=jnp.float32))
        ab = _gelu(pre * sc + sh)

    out_ref[...] = _gelu(ab)       # trailing nn.GELU() of the Sequential


def _pick_nb(n, l, c_x, c_sc, cout, budget_bytes=8 << 20):
    """Largest per-step batch count that (a) keeps >= 2 grid steps when n >= 2 so both
    v7x TensorCores get work, and (b) fits a conservative VMEM budget (double-buffered
    in/out blocks + ~8 live (R, 2C) f32 temporaries)."""
    def step_bytes(nb):
        r = nb * l
        blocks = 2 * r * (c_x + c_sc + 2 * cout) * 4
        live = 8 * r * 2 * cout * 4
        return blocks + live

    best = 1
    for nb in range(1, n + 1):
        if n % nb:
            continue
        if n >= 2 and n // nb < 2:
            continue
        if step_bytes(nb) <= budget_bytes:
            best = nb
    return best


def unet_up_forward(x_ncl, shortcut_ncl, params):
    N, C_X, L = x_ncl.shape
    C_SC = shortcut_ncl.shape[1]
    wt = params['wt']                                # (Cin, Cout, 2)
    Cout = wt.shape[1]
    C2 = 2 * Cout

    # ---- host-side parameter repacking (tiny, one-time) ----
    # ConvT: pack both kernel taps as lane blocks [even | odd], split by input source
    # (the module concatenates (x, shortcut) along channels, in that order).
    wt_pack = jnp.concatenate([wt[:, :, 0], wt[:, :, 1]], axis=1)     # (Cin, 2C)
    wtx = wt_pack[:C_X]                                               # (C_X, 2C)
    wts = wt_pack[C_X:]                                               # (C_SC, 2C)

    # conv taps as (Cin, Cout) matrices: Wm=h[p-1], W0=h[p], Wp=h[p+1]
    wc = params['wc']                                                 # (4, Cout, Cin, 3)
    wm = jnp.transpose(wc[..., 0], (0, 2, 1))
    w0 = jnp.transpose(wc[..., 1], (0, 2, 1))
    wp = jnp.transpose(wc[..., 2], (0, 2, 1))
    zero = jnp.zeros_like(wm)
    # centre weight  WA  = [[W0, Wm], [Wp, W0]]   (operand: ab = [h[2l] | h[2l+1]])
    # neighbour wt   WBC = [[0,  Wp], [Wm, 0 ]]   (operand: nbr = [h[2l+2] | h[2l-1]])
    wa = jnp.concatenate([jnp.concatenate([w0, wm], axis=2),
                          jnp.concatenate([wp, w0], axis=2)], axis=1)   # (4, 2C, 2C)
    wbc = jnp.concatenate([jnp.concatenate([zero, wp], axis=2),
                           jnp.concatenate([wm, zero], axis=2)], axis=1)  # (4, 2C, 2C)
    wnb = jnp.concatenate([wa, wbc], axis=0)                            # (8, 2C, 2C)

    scale = params['gamma'] / jnp.sqrt(params['rv'] + EPS)              # (4, C)
    shift = params['beta'] + scale * (params['cb'] - params['rm'])      # (4, C)
    vecs = jnp.concatenate([
        jnp.concatenate([params['bt'], params['bt']])[None, :],         # row 0: ConvT bias
        jnp.concatenate([scale, scale], axis=1),                        # rows 1-4: BN scale
        jnp.concatenate([shift, shift], axis=1),                        # rows 5-8: BN shift
    ], axis=0)                                                          # (9, 2C)

    # ---- inputs: one NCL->NLC transpose each, flattened so the kernel's matmuls
    # contract the lane axis with zero in-kernel transposes/reshapes ----
    x_flat = jnp.transpose(x_ncl, (0, 2, 1)).reshape(N * L, C_X)
    s_flat = jnp.transpose(shortcut_ncl, (0, 2, 1)).reshape(N * L, C_SC)

    NB = _pick_nb(N, L, C_X, C_SC, Cout)
    R = NB * L

    out = pl.pallas_call(
        functools.partial(_unet_up_kernel, seq_len=L),
        out_shape=jax.ShapeDtypeStruct((N * L, C2), jnp.float32),
        grid_spec=pltpu.PrefetchScalarGridSpec(
            num_scalar_prefetch=0,
            grid=(N // NB,),
            in_specs=[
                pl.BlockSpec((R, C_X), lambda n: (n, 0)),
                pl.BlockSpec((R, C_SC), lambda n: (n, 0)),
                pl.BlockSpec((C_X, C2), lambda n: (0, 0)),
                pl.BlockSpec((C_SC, C2), lambda n: (0, 0)),
                pl.BlockSpec((8, C2, C2), lambda n: (0, 0, 0)),
                pl.BlockSpec((9, C2), lambda n: (0, 0)),
            ],
            out_specs=pl.BlockSpec((R, C2), lambda n: (n, 0)),
        ),
        compiler_params=pltpu.CompilerParams(
            dimension_semantics=("parallel",),
            vmem_limit_bytes=32 * 1024 * 1024),
    )(x_flat, s_flat, wtx, wts, wnb, vecs)

    # (N*L, 2C) with lanes [even | odd] -> (N, 2L, C) is a free contiguous view.
    h = out.reshape(N, 2 * L, Cout)
    # Final NLC -> NCL transpose kept because the PyTorch module returns channels-first.
    return jnp.transpose(h, (0, 2, 1))               # (N, Cout, 2L)


def reference_forward(x_ncl, shortcut_ncl, params):
    """Pure-JAX reference (lax convs + exact erf GELU), channels-first like PyTorch."""
    x = jnp.concatenate([x_ncl, shortcut_ncl], axis=1)
    wt = params['wt']                                        # (Cin, Cout, 2)
    # ConvTranspose1d(k=2, s=2) == conv with lhs_dilation=2, flipped kernel, pad 1
    k = jnp.flip(jnp.transpose(wt, (1, 0, 2)), axis=2)       # (Cout, Cin, 2)
    h = lax.conv_general_dilated(x, k, window_strides=(1,), padding=[(1, 1)],
                                 lhs_dilation=(2,),
                                 dimension_numbers=('NCH', 'OIH', 'NCH'))
    h = h + params['bt'][None, :, None]
    for i in range(4):
        h = lax.conv_general_dilated(h, params['wc'][i], window_strides=(1,),
                                     padding=[(1, 1)],
                                     dimension_numbers=('NCH', 'OIH', 'NCH'))
        h = h + params['cb'][i][None, :, None]
        # BatchNorm1d, inference mode
        h = (h - params['rm'][i][None, :, None]) / jnp.sqrt(
            params['rv'][i][None, :, None] + EPS)
        h = h * params['gamma'][i][None, :, None] + params['beta'][i][None, :, None]
        h = jax.nn.gelu(h, approximate=False)
    return jax.nn.gelu(h, approximate=False)


if __name__ == "__main__":
    N, L = 4, 8
    C_X, C_SC = 8, 8
    CIN = C_X + C_SC            # UnetUp in_channels (after channel concat)
    COUT = 8                    # UnetUp out_channels

    key = jax.random.PRNGKey(0)
    ks = jax.random.split(key, 10)
    x = jax.random.normal(ks[0], (N, C_X, L), jnp.float32)
    shortcut = jax.random.normal(ks[1], (N, C_SC, L), jnp.float32)

    # deterministic synthetic parameters (shapes per module __init__)
    params = {
        'wt': 0.2 * jax.random.normal(ks[2], (CIN, COUT, 2), jnp.float32),      # ConvTranspose1d.weight
        'bt': 0.1 * jax.random.normal(ks[3], (COUT,), jnp.float32),             # ConvTranspose1d.bias
        'wc': 0.2 * jax.random.normal(ks[4], (4, COUT, COUT, 3), jnp.float32),  # 4x Conv1d.weight
        'cb': 0.1 * jax.random.normal(ks[5], (4, COUT), jnp.float32),           # 4x Conv1d.bias
        'gamma': 1.0 + 0.1 * jax.random.normal(ks[6], (4, COUT), jnp.float32),  # 4x BN.weight
        'beta': 0.1 * jax.random.normal(ks[7], (4, COUT), jnp.float32),         # 4x BN.bias
        'rm': 0.1 * jax.random.normal(ks[8], (4, COUT), jnp.float32),           # 4x BN.running_mean
        'rv': jax.random.uniform(ks[9], (4, COUT), jnp.float32, 0.5, 1.5),      # 4x BN.running_var
    }

    out = jax.block_until_ready(unet_up_forward(x, shortcut, params))
    ref = jax.block_until_ready(reference_forward(x, shortcut, params))

    assert out.shape == (N, COUT, 2 * L), out.shape
    err = float(jnp.max(jnp.abs(out - ref)))
    assert err < 2e-3, f"max abs err vs reference: {err}"
    print("KERNEL_OK")
</pallas_src>

<mosaic_0001>
module attributes {stable_mosaic.version = 11 : i64} {
  func.func @_unet_up_kernel(%arg0: i32, %arg1: memref<16x8xf32, #tpu.memory_space<vmem>>, %arg2: memref<16x8xf32, #tpu.memory_space<vmem>>, %arg3: memref<8x16xf32, #tpu.memory_space<vmem>>, %arg4: memref<8x16xf32, #tpu.memory_space<vmem>>, %arg5: memref<8x16x16xf32, #tpu.memory_space<vmem>>, %arg6: memref<9x16xf32, #tpu.memory_space<vmem>>, %arg7: memref<16x16xf32, #tpu.memory_space<vmem>>) attributes {dimension_semantics = [#tpu.dimension_semantics<parallel>], iteration_bounds = array<i64: 2>, scalar_prefetch = 0 : i64, scratch_operands = 0 : i64, tpu.core_type = #tpu.core_type<tc>, window_params = [{transform_indices = @transform_0, window_bounds = array<i64: 16, 8>}, {transform_indices = @transform_1, window_bounds = array<i64: 16, 8>}, {pipeline_mode = #tpu.pipeline_mode<synchronous>, transform_indices = @transform_2, window_bounds = array<i64: 8, 16>}, {pipeline_mode = #tpu.pipeline_mode<synchronous>, transform_indices = @transform_3, window_bounds = array<i64: 8, 16>}, {pipeline_mode = #tpu.pipeline_mode<synchronous>, transform_indices = @transform_4, window_bounds = array<i64: 8, 16, 16>}, {pipeline_mode = #tpu.pipeline_mode<synchronous>, transform_indices = @transform_5, window_bounds = array<i64: 9, 16>}, {transform_indices = @transform_6, window_bounds = array<i64: 16, 16>}]} {
    %c0 = arith.constant 0 : index
    %c0_0 = arith.constant 0 : index
    %0 = vector.load %arg6[%c0, %c0_0] : memref<9x16xf32, #tpu.memory_space<vmem>>, vector<9x16xf32>
    %1 = vector.extract_strided_slice %0 {offsets = [0, 0], sizes = [1, 16], strides = [1, 1]} : vector<9x16xf32> to vector<1x16xf32>
    %2 = tpu.iota {dimensions = array<i32: 0>} : vector<16x16xi32>
    %3 = tpu.iota {dimensions = array<i32: 1>} : vector<16x16xi32>
    %c8_i32 = arith.constant 8 : i32
    %c0_i32 = arith.constant 0 : i32
    %4 = arith.cmpi eq, %c8_i32, %c0_i32 : i32
    %c1_i32 = arith.constant 1 : i32
    %5 = arith.select %4, %c1_i32, %c8_i32 : i32
    %6 = vector.broadcast %5 : i32 to vector<16x16xi32>
    %7 = arith.remsi %2, %6 : vector<16x16xi32>
    %c0_i32_1 = arith.constant 0 : i32
    %8 = vector.broadcast %c0_i32_1 : i32 to vector<16x16xi32>
    %9 = arith.cmpi ne, %7, %8 : vector<16x16xi32>
    %c0_i32_2 = arith.constant 0 : i32
    %10 = vector.broadcast %c0_i32_2 : i32 to vector<16x16xi32>
    %11 = arith.cmpi slt, %7, %10 : vector<16x16xi32>
    %c0_i32_3 = arith.constant 0 : i32
    %12 = arith.cmpi slt, %5, %c0_i32_3 : i32
    %13 = vector.broadcast %12 : i1 to vector<16x16xi1>
    %14 = vector.broadcast %13 : vector<16x16xi1> to vector<16x16xi1>
    %15 = arith.xori %11, %14 : vector<16x16xi1>
    %16 = arith.andi %15, %9 : vector<16x16xi1>
    %17 = vector.broadcast %5 : i32 to vector<16x16xi32>
    %18 = arith.addi %7, %17 : vector<16x16xi32>
    %19 = arith.select %16, %18, %7 : vector<16x16xi1>, vector<16x16xi32>
    %c0_i32_4 = arith.constant 0 : i32
    %20 = vector.broadcast %c0_i32_4 : i32 to vector<16x16xi32>
    %21 = arith.cmpi ne, %19, %20 : vector<16x16xi32>
    %c7_i32 = arith.constant 7 : i32
    %22 = vector.broadcast %c7_i32 : i32 to vector<16x16xi32>
    %23 = arith.cmpi ne, %19, %22 : vector<16x16xi32>
    %c8_i32_5 = arith.constant 8 : i32
    %24 = vector.broadcast %c8_i32_5 : i32 to vector<16x16xi32>
    %25 = arith.cmpi slt, %3, %24 : vector<16x16xi32>
    %c0_6 = arith.constant 0 : index
    %c0_7 = arith.constant 0 : index
    %26 = vector.load %arg1[%c0_6, %c0_7] : memref<16x8xf32, #tpu.memory_space<vmem>>, vector<16x8xf32>
    %c0_8 = arith.constant 0 : index
    %c0_9 = arith.constant 0 : index
    %27 = vector.load %arg3[%c0_8, %c0_9] : memref<8x16xf32, #tpu.memory_space<vmem>>, vector<8x16xf32>
    %cst = arith.constant dense<0.000000e+00> : vector<16x16xf32>
    %28 = tpu.matmul %26, %27, %cst {dimension_numbers = #tpu.dot_dimension_numbers<[1], [0], [0], [1], [0, 0, 1, 1], [], []>} : vector<16x8xf32>, vector<8x16xf32>, vector<16x16xf32> -> vector<16x16xf32>
    %c0_10 = arith.constant 0 : index
    %c0_11 = arith.constant 0 : index
    %29 = vector.load %arg2[%c0_10, %c0_11] : memref<16x8xf32, #tpu.memory_space<vmem>>, vector<16x8xf32>
    %c0_12 = arith.constant 0 : index
    %c0_13 = arith.constant 0 : index
    %30 = vector.load %arg4[%c0_12, %c0_13] : memref<8x16xf32, #tpu.memory_space<vmem>>, vector<8x16xf32>
    %cst_14 = arith.constant dense<0.000000e+00> : vector<16x16xf32>
    %31 = tpu.matmul %29, %30, %cst_14 {dimension_numbers = #tpu.dot_dimension_numbers<[1], [0], [0], [1], [0, 0, 1, 1], [], []>} : vector<16x8xf32>, vector<8x16xf32>, vector<16x16xf32> -> vector<16x16xf32>
    %32 = arith.addf %28, %31 : vector<16x16xf32>
    %33 = vector.broadcast %1 : vector<1x16xf32> to vector<16x16xf32>
    %34 = arith.addf %32, %33 : vector<16x16xf32>
    %35 = vector.extract_strided_slice %0 {offsets = [1, 0], sizes = [1, 16], strides = [1, 1]} : vector<9x16xf32> to vector<1x16xf32>
    %36 = vector.extract_strided_slice %0 {offsets = [5, 0], sizes = [1, 16], strides = [1, 1]} : vector<9x16xf32> to vector<1x16xf32>
    %c1_i32_15 = arith.constant 1 : i32
    %37 = tpu.dynamic_rotate %34 by %c1_i32_15 dim 0 : vector<16x16xf32>, i32 -> vector<16x16xf32>
    %cst_16 = arith.constant 0.000000e+00 : f32
    %38 = vector.broadcast %cst_16 : f32 to vector<16x16xf32>
    %39 = arith.select %21, %37, %38 : vector<16x16xi1>, vector<16x16xf32>
    %c15_i32 = arith.constant 15 : i32
    %40 = tpu.dynamic_rotate %34 by %c15_i32 dim 0 : vector<16x16xf32>, i32 -> vector<16x16xf32>
    %cst_17 = arith.constant 0.000000e+00 : f32
    %41 = vector.broadcast %cst_17 : f32 to vector<16x16xf32>
    %42 = arith.select %23, %40, %41 : vector<16x16xi1>, vector<16x16xf32>
    %43 = arith.select %25, %42, %39 : vector<16x16xi1>, vector<16x16xf32>
    %c0_18 = arith.constant 0 : index
    %c0_19 = arith.constant 0 : index
    %c0_20 = arith.constant 0 : index
    %44 = vector.load %arg5[%c0_18, %c0_19, %c0_20] : memref<8x16x16xf32, #tpu.memory_space<vmem>>, vector<1x16x16xf32>
    %45 = vector.shape_cast %44 : vector<1x16x16xf32> to vector<16x16xf32>
    %cst_21 = arith.constant dense<0.000000e+00> : vector<16x16xf32>
    %46 = tpu.matmul %34, %45, %cst_21 {dimension_numbers = #tpu.dot_dimension_numbers<[1], [0], [0], [1], [0, 0, 1, 1], [], []>} : vector<16x16xf32>, vector<16x16xf32>, vector<16x16xf32> -> vector<16x16xf32>
    %c4 = arith.constant 4 : index
    %c0_22 = arith.constant 0 : index
    %c0_23 = arith.constant 0 : index
    %47 = vector.load %arg5[%c4, %c0_22, %c0_23] : memref<8x16x16xf32, #tpu.memory_space<vmem>>, vector<1x16x16xf32>
    %48 = vector.shape_cast %47 : vector<1x16x16xf32> to vector<16x16xf32>
    %cst_24 = arith.constant dense<0.000000e+00> : vector<16x16xf32>
    %49 = tpu.matmul %43, %48, %cst_24 {dimension_numbers = #tpu.dot_dimension_numbers<[1], [0], [0], [1], [0, 0, 1, 1], [], []>} : vector<16x16xf32>, vector<16x16xf32>, vector<16x16xf32> -> vector<16x16xf32>
    %50 = arith.addf %46, %49 : vector<16x16xf32>
    %51 = vector.broadcast %35 : vector<1x16xf32> to vector<16x16xf32>
    %52 = arith.mulf %50, %51 : vector<16x16xf32>
    %53 = vector.broadcast %36 : vector<1x16xf32> to vector<16x16xf32>
    %54 = arith.addf %52, %53 : vector<16x16xf32>
    %cst_25 = arith.constant 5.000000e-01 : f32
    %55 = vector.broadcast %cst_25 : f32 to vector<16x16xf32>
    %56 = arith.mulf %55, %54 : vector<16x16xf32>
    %cst_26 = arith.constant 0.707106769 : f32
    %57 = vector.broadcast %cst_26 : f32 to vector<16x16xf32>
    %58 = arith.mulf %54, %57 : vector<16x16xf32>
    %59 = math.absf %58 : vector<16x16xf32>
    %cst_27 = arith.constant 0.327591091 : f32
    %60 = vector.broadcast %cst_27 : f32 to vector<16x16xf32>
    %61 = arith.mulf %60, %59 : vector<16x16xf32>
    %cst_28 = arith.constant 1.000000e+00 : f32
    %62 = vector.broadcast %cst_28 : f32 to vector<16x16xf32>
    %63 = arith.addf %62, %61 : vector<16x16xf32>
    %cst_29 = arith.constant 1.000000e+00 : f32
    %64 = vector.broadcast %cst_29 : f32 to vector<16x16xf32>
    %65 = arith.divf %64, %63 : vector<16x16xf32>
    %cst_30 = arith.constant 1.06140542 : f32
    %66 = vector.broadcast %cst_30 : f32 to vector<16x16xf32>
    %67 = arith.mulf %66, %65 : vector<16x16xf32>
    %cst_31 = arith.constant -1.45315206 : f32
    %68 = vector.broadcast %cst_31 : f32 to vector<16x16xf32>
    %69 = arith.addf %67, %68 : vector<16x16xf32>
    %70 = arith.mulf %69, %65 : vector<16x16xf32>
    %cst_32 = arith.constant 1.42141378 : f32
    %71 = vector.broadcast %cst_32 : f32 to vector<16x16xf32>
    %72 = arith.addf %70, %71 : vector<16x16xf32>
    %73 = arith.mulf %72, %65 : vector<16x16xf32>
    %cst_33 = arith.constant -0.284496725 : f32
    %74 = vector.broadcast %cst_33 : f32 to vector<16x16xf32>
    %75 = arith.addf %73, %74 : vector<16x16xf32>
    %76 = arith.mulf %75, %65 : vector<16x16xf32>
    %cst_34 = arith.constant 0.254829586 : f32
    %77 = vector.broadcast %cst_34 : f32 to vector<16x16xf32>
    %78 = arith.addf %76, %77 : vector<16x16xf32>
    %79 = arith.mulf %78, %65 : vector<16x16xf32>
    %80 = arith.mulf %59, %59 : vector<16x16xf32>
    %cst_35 = arith.constant 0.000000e+00 : f32
    %81 = vector.broadcast %cst_35 : f32 to vector<16x16xf32>
    %82 = arith.subf %81, %80 : vector<16x16xf32>
    %83 = math.exp %82 : vector<16x16xf32>
    %84 = arith.mulf %79, %83 : vector<16x16xf32>
    %cst_36 = arith.constant 0.000000e+00 : f32
    %85 = vector.broadcast %cst_36 : f32 to vector<16x16xf32>
    %86 = arith.cmpf olt, %58, %85 : vector<16x16xf32>
    %cst_37 = arith.constant 1.000000e+00 : f32
    %87 = vector.broadcast %cst_37 : f32 to vector<16x16xf32>
    %88 = arith.subf %84, %87 : vector<16x16xf32>
    %cst_38 = arith.constant 1.000000e+00 : f32
    %89 = vector.broadcast %cst_38 : f32 to vector<16x16xf32>
    %90 = arith.subf %89, %84 : vector<16x16xf32>
    %91 = arith.select %86, %88, %90 : vector<16x16xi1>, vector<16x16xf32>
    %cst_39 = arith.constant 1.000000e+00 : f32
    %92 = vector.broadcast %cst_39 : f32 to vector<16x16xf32>
    %93 = arith.addf %92, %91 : vector<16x16xf32>
    %94 = arith.mulf %56, %93 : vector<16x16xf32>
    %95 = vector.extract_strided_slice %0 {offsets = [2, 0], sizes = [1, 16], strides = [1, 1]} : vector<9x16xf32> to vector<1x16xf32>
    %96 = vector.extract_strided_slice %0 {offsets = [6, 0], sizes = [1, 16], strides = [1, 1]} : vector<9x16xf32> to vector<1x16xf32>
    %c1_i32_40 = arith.constant 1 : i32
    %97 = tpu.dynamic_rotate %94 by %c1_i32_40 dim 0 : vector<16x16xf32>, i32 -> vector<16x16xf32>
    %cst_41 = arith.constant 0.000000e+00 : f32
    %98 = vector.broadcast %cst_41 : f32 to vector<16x16xf32>
    %99 = arith.select %21, %97, %98 : vector<16x16xi1>, vector<16x16xf32>
    %c15_i32_42 = arith.constant 15 : i32
    %100 = tpu.dynamic_rotate %94 by %c15_i32_42 dim 0 : vector<16x16xf32>, i32 -> vector<16x16xf32>
    %cst_43 = arith.constant 0.000000e+00 : f32
    %101 = vector.broadcast %cst_43 : f32 to vector<16x16xf32>
    %102 = arith.select %23, %100, %101 : vector<16x16xi1>, vector<16x16xf32>
    %103 = arith.select %25, %102, %99 : vector<16x16xi1>, vector<16x16xf32>
    %c1 = arith.constant 1 : index
    %c0_44 = arith.constant 0 : index
    %c0_45 = arith.constant 0 : index
    %104 = vector.load %arg5[%c1, %c0_44, %c0_45] : memref<8x16x16xf32, #tpu.memory_space<vmem>>, vector<1x16x16xf32>
    %105 = vector.shape_cast %104 : vector<1x16x16xf32> to vector<16x16xf32>
    %cst_46 = arith.constant dense<0.000000e+00> : vector<16x16xf32>
    %106 = tpu.matmul %94, %105, %cst_46 {dimension_numbers = #tpu.dot_dimension_numbers<[1], [0], [0], [1], [0, 0, 1, 1], [], []>} : vector<16x16xf32>, vector<16x16xf32>, vector<16x16xf32> -> vector<16x16xf32>
    %c5 = arith.constant 5 : index
    %c0_47 = arith.constant 0 : index
    %c0_48 = arith.constant 0 : index
    %107 = vector.load %arg5[%c5, %c0_47, %c0_48] : memref<8x16x16xf32, #tpu.memory_space<vmem>>, vector<1x16x16xf32>
    %108 = vector.shape_cast %107 : vector<1x16x16xf32> to vector<16x16xf32>
    %cst_49 = arith.constant dense<0.000000e+00> : vector<16x16xf32>
    %109 = tpu.matmul %103, %108, %cst_49 {dimension_numbers = #tpu.dot_dimension_numbers<[1], [0], [0], [1], [0, 0, 1, 1], [], []>} : vector<16x16xf32>, vector<16x16xf32>, vector<16x16xf32> -> vector<16x16xf32>
    %110 = arith.addf %106, %109 : vector<16x16xf32>
    %111 = vector.broadcast %95 : vector<1x16xf32> to vector<16x16xf32>
    %112 = arith.mulf %110, %111 : vector<16x16xf32>
    %113 = vector.broadcast %96 : vector<1x16xf32> to vector<16x16xf32>
    %114 = arith.addf %112, %113 : vector<16x16xf32>
    %cst_50 = arith.constant 5.000000e-01 : f32
    %115 = vector.broadcast %cst_50 : f32 to vector<16x16xf32>
    %116 = arith.mulf %115, %114 : vector<16x16xf32>
    %cst_51 = arith.constant 0.707106769 : f32
    %117 = vector.broadcast %cst_51 : f32 to vector<16x16xf32>
    %118 = arith.mulf %114, %117 : vector<16x16xf32>
    %119 = math.absf %118 : vector<16x16xf32>
    %cst_52 = arith.constant 0.327591091 : f32
    %120 = vector.broadcast %cst_52 : f32 to vector<16x16xf32>
    %121 = arith.mulf %120, %119 : vector<16x16xf32>
    %cst_53 = arith.constant 1.000000e+00 : f32
    %122 = vector.broadcast %cst_53 : f32 to vector<16x16xf32>
    %123 = arith.addf %122, %121 : vector<16x16xf32>
    %cst_54 = arith.constant 1.000000e+00 : f32
    %124 = vector.broadcast %cst_54 : f32 to vector<16x16xf32>
    %125 = arith.divf %124, %123 : vector<16x16xf32>
    %cst_55 = arith.constant 1.06140542 : f32
    %126 = vector.broadcast %cst_55 : f32 to vector<16x16xf32>
    %127 = arith.mulf %126, %125 : vector<16x16xf32>
    %cst_56 = arith.constant -1.45315206 : f32
    %128 = vector.broadcast %cst_56 : f32 to vector<16x16xf32>
    %129 = arith.addf %127, %128 : vector<16x16xf32>
    %130 = arith.mulf %129, %125 : vector<16x16xf32>
    %cst_57 = arith.constant 1.42141378 : f32
    %131 = vector.broadcast %cst_57 : f32 to vector<16x16xf32>
    %132 = arith.addf %130, %131 : vector<16x16xf32>
    %133 = arith.mulf %132, %125 : vector<16x16xf32>
    %cst_58 = arith.constant -0.284496725 : f32
    %134 = vector.broadcast %cst_58 : f32 to vector<16x16xf32>
    %135 = arith.addf %133, %134 : vector<16x16xf32>
    %136 = arith.mulf %135, %125 : vector<16x16xf32>
    %cst_59 = arith.constant 0.254829586 : f32
    %137 = vector.broadcast %cst_59 : f32 to vector<16x16xf32>
    %138 = arith.addf %136, %137 : vector<16x16xf32>
    %139 = arith.mulf %138, %125 : vector<16x16xf32>
    %140 = arith.mulf %119, %119 : vector<16x16xf32>
    %cst_60 = arith.constant 0.000000e+00 : f32
    %141 = vector.broadcast %cst_60 : f32 to vector<16x16xf32>
    %142 = arith.subf %141, %140 : vector<16x16xf32>
    %143 = math.exp %142 : vector<16x16xf32>
    %144 = arith.mulf %139, %143 : vector<16x16xf32>
    %cst_61 = arith.constant 0.000000e+00 : f32
    %145 = vector.broadcast %cst_61 : f32 to vector<16x16xf32>
    %146 = arith.cmpf olt, %118, %145 : vector<16x16xf32>
    %cst_62 = arith.constant 1.000000e+00 : f32
    %147 = vector.broadcast %cst_62 : f32 to vector<16x16xf32>
    %148 = arith.subf %144, %147 : vector<16x16xf32>
    %cst_63 = arith.constant 1.000000e+00 : f32
    %149 = vector.broadcast %cst_63 : f32 to vector<16x16xf32>
    %150 = arith.subf %149, %144 : vector<16x16xf32>
    %151 = arith.select %146, %148, %150 : vector<16x16xi1>, vector<16x16xf32>
    %cst_64 = arith.constant 1.000000e+00 : f32
    %152 = vector.broadcast %cst_64 : f32 to vector<16x16xf32>
    %153 = arith.addf %152, %151 : vector<16x16xf32>
    %154 = arith.mulf %116, %153 : vector<16x16xf32>
    %155 = vector.extract_strided_slice %0 {offsets = [3, 0], sizes = [1, 16], strides = [1, 1]} : vector<9x16xf32> to vector<1x16xf32>
    %156 = vector.extract_strided_slice %0 {offsets = [7, 0], sizes = [1, 16], strides = [1, 1]} : vector<9x16xf32> to vector<1x16xf32>
    %c1_i32_65 = arith.constant 1 : i32
    %157 = tpu.dynamic_rotate %154 by %c1_i32_65 dim 0 : vector<16x16xf32>, i32 -> vector<16x16xf32>
    %cst_66 = arith.constant 0.000000e+00 : f32
    %158 = vector.broadcast %cst_66 : f32 to vector<16x16xf32>
    %159 = arith.select %21, %157, %158 : vector<16x16xi1>, vector<16x16xf32>
    %c15_i32_67 = arith.constant 15 : i32
    %160 = tpu.dynamic_rotate %154 by %c15_i32_67 dim 0 : vector<16x16xf32>, i32 -> vector<16x16xf32>
    %cst_68 = arith.constant 0.000000e+00 : f32
    %161 = vector.broadcast %cst_68 : f32 to vector<16x16xf32>
    %162 = arith.select %23, %160, %161 : vector<16x16xi1>, vector<16x16xf32>
    %163 = arith.select %25, %162, %159 : vector<16x16xi1>, vector<16x16xf32>
    %c2 = arith.constant 2 : index
    %c0_69 = arith.constant 0 : index
    %c0_70 = arith.constant 0 : index
    %164 = vector.load %arg5[%c2, %c0_69, %c0_70] : memref<8x16x16xf32, #tpu.memory_space<vmem>>, vector<1x16x16xf32>
    %165 = vector.shape_cast %164 : vector<1x16x16xf32> to vector<16x16xf32>
    %cst_71 = arith.constant dense<0.000000e+00> : vector<16x16xf32>
    %166 = tpu.matmul %154, %165, %cst_71 {dimension_numbers = #tpu.dot_dimension_numbers<[1], [0], [0], [1], [0, 0, 1, 1], [], []>} : vector<16x16xf32>, vector<16x16xf32>, vector<16x16xf32> -> vector<16x16xf32>
    %c6 = arith.constant 6 : index
    %c0_72 = arith.constant 0 : index
    %c0_73 = arith.constant 0 : index
    %167 = vector.load %arg5[%c6, %c0_72, %c0_73] : memref<8x16x16xf32, #tpu.memory_space<vmem>>, vector<1x16x16xf32>
    %168 = vector.shape_cast %167 : vector<1x16x16xf32> to vector<16x16xf32>
    %cst_74 = arith.constant dense<0.000000e+00> : vector<16x16xf32>
    %169 = tpu.matmul %163, %168, %cst_74 {dimension_numbers = #tpu.dot_dimension_numbers<[1], [0], [0], [1], [0, 0, 1, 1], [], []>} : vector<16x16xf32>, vector<16x16xf32>, vector<16x16xf32> -> vector<16x16xf32>
    %170 = arith.addf %166, %169 : vector<16x16xf32>
    %171 = vector.broadcast %155 : vector<1x16xf32> to vector<16x16xf32>
    %172 = arith.mulf %170, %171 : vector<16x16xf32>
    %173 = vector.broadcast %156 : vector<1x16xf32> to vector<16x16xf32>
    %174 = arith.addf %172, %173 : vector<16x16xf32>
    %cst_75 = arith.constant 5.000000e-01 : f32
    %175 = vector.broadcast %cst_75 : f32 to vector<16x16xf32>
    %176 = arith.mulf %175, %174 : vector<16x16xf32>
    %cst_76 = arith.constant 0.707106769 : f32
    %177 = vector.broadcast %cst_76 : f32 to vector<16x16xf32>
    %178 = arith.mulf %174, %177 : vector<16x16xf32>
    %179 = math.absf %178 : vector<16x16xf32>
    %cst_77 = arith.constant 0.327591091 : f32
    %180 = vector.broadcast %cst_77 : f32 to vector<16x16xf32>
    %181 = arith.mulf %180, %179 : vector<16x16xf32>
    %cst_78 = arith.constant 1.000000e+00 : f32
    %182 = vector.broadcast %cst_78 : f32 to vector<16x16xf32>
    %183 = arith.addf %182, %181 : vector<16x16xf32>
    %cst_79 = arith.constant 1.000000e+00 : f32
    %184 = vector.broadcast %cst_79 : f32 to vector<16x16xf32>
    %185 = arith.divf %184, %183 : vector<16x16xf32>
    %cst_80 = arith.constant 1.06140542 : f32
    %186 = vector.broadcast %cst_80 : f32 to vector<16x16xf32>
    %187 = arith.mulf %186, %185 : vector<16x16xf32>
    %cst_81 = arith.constant -1.45315206 : f32
    %188 = vector.broadcast %cst_81 : f32 to vector<16x16xf32>
    %189 = arith.addf %187, %188 : vector<16x16xf32>
    %190 = arith.mulf %189, %185 : vector<16x16xf32>
    %cst_82 = arith.constant 1.42141378 : f32
    %191 = vector.broadcast %cst_82 : f32 to vector<16x16xf32>
    %192 = arith.addf %190, %191 : vector<16x16xf32>
    %193 = arith.mulf %192, %185 : vector<16x16xf32>
    %cst_83 = arith.constant -0.284496725 : f32
    %194 = vector.broadcast %cst_83 : f32 to vector<16x16xf32>
    %195 = arith.addf %193, %194 : vector<16x16xf32>
    %196 = arith.mulf %195, %185 : vector<16x16xf32>
    %cst_84 = arith.constant 0.254829586 : f32
    %197 = vector.broadcast %cst_84 : f32 to vector<16x16xf32>
    %198 = arith.addf %196, %197 : vector<16x16xf32>
    %199 = arith.mulf %198, %185 : vector<16x16xf32>
    %200 = arith.mulf %179, %179 : vector<16x16xf32>
    %cst_85 = arith.constant 0.000000e+00 : f32
    %201 = vector.broadcast %cst_85 : f32 to vector<16x16xf32>
    %202 = arith.subf %201, %200 : vector<16x16xf32>
    %203 = math.exp %202 : vector<16x16xf32>
    %204 = arith.mulf %199, %203 : vector<16x16xf32>
    %cst_86 = arith.constant 0.000000e+00 : f32
    %205 = vector.broadcast %cst_86 : f32 to vector<16x16xf32>
    %206 = arith.cmpf olt, %178, %205 : vector<16x16xf32>
    %cst_87 = arith.constant 1.000000e+00 : f32
    %207 = vector.broadcast %cst_87 : f32 to vector<16x16xf32>
    %208 = arith.subf %204, %207 : vector<16x16xf32>
    %cst_88 = arith.constant 1.000000e+00 : f32
    %209 = vector.broadcast %cst_88 : f32 to vector<16x16xf32>
    %210 = arith.subf %209, %204 : vector<16x16xf32>
    %211 = arith.select %206, %208, %210 : vector<16x16xi1>, vector<16x16xf32>
    %cst_89 = arith.constant 1.000000e+00 : f32
    %212 = vector.broadcast %cst_89 : f32 to vector<16x16xf32>
    %213 = arith.addf %212, %211 : vector<16x16xf32>
    %214 = arith.mulf %176, %213 : vector<16x16xf32>
    %215 = vector.extract_strided_slice %0 {offsets = [4, 0], sizes = [1, 16], strides = [1, 1]} : vector<9x16xf32> to vector<1x16xf32>
    %216 = vector.extract_strided_slice %0 {offsets = [8, 0], sizes = [1, 16], strides = [1, 1]} : vector<9x16xf32> to vector<1x16xf32>
    %c1_i32_90 = arith.constant 1 : i32
    %217 = tpu.dynamic_rotate %214 by %c1_i32_90 dim 0 : vector<16x16xf32>, i32 -> vector<16x16xf32>
    %cst_91 = arith.constant 0.000000e+00 : f32
    %218 = vector.broadcast %cst_91 : f32 to vector<16x16xf32>
    %219 = arith.select %21, %217, %218 : vector<16x16xi1>, vector<16x16xf32>
    %c15_i32_92 = arith.constant 15 : i32
    %220 = tpu.dynamic_rotate %214 by %c15_i32_92 dim 0 : vector<16x16xf32>, i32 -> vector<16x16xf32>
    %cst_93 = arith.constant 0.000000e+00 : f32
    %221 = vector.broadcast %cst_93 : f32 to vector<16x16xf32>
    %222 = arith.select %23, %220, %221 : vector<16x16xi1>, vector<16x16xf32>
    %223 = arith.select %25, %222, %219 : vector<16x16xi1>, vector<16x16xf32>
    %c3 = arith.constant 3 : index
    %c0_94 = arith.constant 0 : index
    %c0_95 = arith.constant 0 : index
    %224 = vector.load %arg5[%c3, %c0_94, %c0_95] : memref<8x16x16xf32, #tpu.memory_space<vmem>>, vector<1x16x16xf32>
    %225 = vector.shape_cast %224 : vector<1x16x16xf32> to vector<16x16xf32>
    %cst_96 = arith.constant dense<0.000000e+00> : vector<16x16xf32>
    %226 = tpu.matmul %214, %225, %cst_96 {dimension_numbers = #tpu.dot_dimension_numbers<[1], [0], [0], [1], [0, 0, 1, 1], [], []>} : vector<16x16xf32>, vector<16x16xf32>, vector<16x16xf32> -> vector<16x16xf32>
    %c7 = arith.constant 7 : index
    %c0_97 = arith.constant 0 : index
    %c0_98 = arith.constant 0 : index
    %227 = vector.load %arg5[%c7, %c0_97, %c0_98] : memref<8x16x16xf32, #tpu.memory_space<vmem>>, vector<1x16x16xf32>
    %228 = vector.shape_cast %227 : vector<1x16x16xf32> to vector<16x16xf32>
    %cst_99 = arith.constant dense<0.000000e+00> : vector<16x16xf32>
    %229 = tpu.matmul %223, %228, %cst_99 {dimension_numbers = #tpu.dot_dimension_numbers<[1], [0], [0], [1], [0, 0, 1, 1], [], []>} : vector<16x16xf32>, vector<16x16xf32>, vector<16x16xf32> -> vector<16x16xf32>
    %230 = arith.addf %226, %229 : vector<16x16xf32>
    %231 = vector.broadcast %215 : vector<1x16xf32> to vector<16x16xf32>
    %232 = arith.mulf %230, %231 : vector<16x16xf32>
    %233 = vector.broadcast %216 : vector<1x16xf32> to vector<16x16xf32>
    %234 = arith.addf %232, %233 : vector<16x16xf32>
    %cst_100 = arith.constant 5.000000e-01 : f32
    %235 = vector.broadcast %cst_100 : f32 to vector<16x16xf32>
    %236 = arith.mulf %235, %234 : vector<16x16xf32>
    %cst_101 = arith.constant 0.707106769 : f32
    %237 = vector.broadcast %cst_101 : f32 to vector<16x16xf32>
    %238 = arith.mulf %234, %237 : vector<16x16xf32>
    %239 = math.absf %238 : vector<16x16xf32>
    %cst_102 = arith.constant 0.327591091 : f32
    %240 = vector.broadcast %cst_102 : f32 to vector<16x16xf32>
    %241 = arith.mulf %240, %239 : vector<16x16xf32>
    %cst_103 = arith.constant 1.000000e+00 : f32
    %242 = vector.broadcast %cst_103 : f32 to vector<16x16xf32>
    %243 = arith.addf %242, %241 : vector<16x16xf32>
    %cst_104 = arith.constant 1.000000e+00 : f32
    %244 = vector.broadcast %cst_104 : f32 to vector<16x16xf32>
    %245 = arith.divf %244, %243 : vector<16x16xf32>
    %cst_105 = arith.constant 1.06140542 : f32
    %246 = vector.broadcast %cst_105 : f32 to vector<16x16xf32>
    %247 = arith.mulf %246, %245 : vector<16x16xf32>
    %cst_106 = arith.constant -1.45315206 : f32
    %248 = vector.broadcast %cst_106 : f32 to vector<16x16xf32>
    %249 = arith.addf %247, %248 : vector<16x16xf32>
    %250 = arith.mulf %249, %245 : vector<16x16xf32>
    %cst_107 = arith.constant 1.42141378 : f32
    %251 = vector.broadcast %cst_107 : f32 to vector<16x16xf32>
    %252 = arith.addf %250, %251 : vector<16x16xf32>
    %253 = arith.mulf %252, %245 : vector<16x16xf32>
    %cst_108 = arith.constant -0.284496725 : f32
    %254 = vector.broadcast %cst_108 : f32 to vector<16x16xf32>
    %255 = arith.addf %253, %254 : vector<16x16xf32>
    %256 = arith.mulf %255, %245 : vector<16x16xf32>
    %cst_109 = arith.constant 0.254829586 : f32
    %257 = vector.broadcast %cst_109 : f32 to vector<16x16xf32>
    %258 = arith.addf %256, %257 : vector<16x16xf32>
    %259 = arith.mulf %258, %245 : vector<16x16xf32>
    %260 = arith.mulf %239, %239 : vector<16x16xf32>
    %cst_110 = arith.constant 0.000000e+00 : f32
    %261 = vector.broadcast %cst_110 : f32 to vector<16x16xf32>
    %262 = arith.subf %261, %260 : vector<16x16xf32>
    %263 = math.exp %262 : vector<16x16xf32>
    %264 = arith.mulf %259, %263 : vector<16x16xf32>
    %cst_111 = arith.constant 0.000000e+00 : f32
    %265 = vector.broadcast %cst_111 : f32 to vector<16x16xf32>
    %266 = arith.cmpf olt, %238, %265 : vector<16x16xf32>
    %cst_112 = arith.constant 1.000000e+00 : f32
    %267 = vector.broadcast %cst_112 : f32 to vector<16x16xf32>
    %268 = arith.subf %264, %267 : vector<16x16xf32>
    %cst_113 = arith.constant 1.000000e+00 : f32
    %269 = vector.broadcast %cst_113 : f32 to vector<16x16xf32>
    %270 = arith.subf %269, %264 : vector<16x16xf32>
    %271 = arith.select %266, %268, %270 : vector<16x16xi1>, vector<16x16xf32>
    %cst_114 = arith.constant 1.000000e+00 : f32
    %272 = vector.broadcast %cst_114 : f32 to vector<16x16xf32>
    %273 = arith.addf %272, %271 : vector<16x16xf32>
    %274 = arith.mulf %236, %273 : vector<16x16xf32>
    %cst_115 = arith.constant 5.000000e-01 : f32
    %275 = vector.broadcast %cst_115 : f32 to vector<16x16xf32>
    %276 = arith.mulf %275, %274 : vector<16x16xf32>
    %cst_116 = arith.constant 0.707106769 : f32
    %277 = vector.broadcast %cst_116 : f32 to vector<16x16xf32>
    %278 = arith.mulf %274, %277 : vector<16x16xf32>
    %279 = math.absf %278 : vector<16x16xf32>
    %cst_117 = arith.constant 0.327591091 : f32
    %280 = vector.broadcast %cst_117 : f32 to vector<16x16xf32>
    %281 = arith.mulf %280, %279 : vector<16x16xf32>
    %cst_118 = arith.constant 1.000000e+00 : f32
    %282 = vector.broadcast %cst_118 : f32 to vector<16x16xf32>
    %283 = arith.addf %282, %281 : vector<16x16xf32>
    %cst_119 = arith.constant 1.000000e+00 : f32
    %284 = vector.broadcast %cst_119 : f32 to vector<16x16xf32>
    %285 = arith.divf %284, %283 : vector<16x16xf32>
    %cst_120 = arith.constant 1.06140542 : f32
    %286 = vector.broadcast %cst_120 : f32 to vector<16x16xf32>
    %287 = arith.mulf %286, %285 : vector<16x16xf32>
    %cst_121 = arith.constant -1.45315206 : f32
    %288 = vector.broadcast %cst_121 : f32 to vector<16x16xf32>
    %289 = arith.addf %287, %288 : vector<16x16xf32>
    %290 = arith.mulf %289, %285 : vector<16x16xf32>
    %cst_122 = arith.constant 1.42141378 : f32
    %291 = vector.broadcast %cst_122 : f32 to vector<16x16xf32>
    %292 = arith.addf %290, %291 : vector<16x16xf32>
    %293 = arith.mulf %292, %285 : vector<16x16xf32>
    %cst_123 = arith.constant -0.284496725 : f32
    %294 = vector.broadcast %cst_123 : f32 to vector<16x16xf32>
    %295 = arith.addf %293, %294 : vector<16x16xf32>
    %296 = arith.mulf %295, %285 : vector<16x16xf32>
    %cst_124 = arith.constant 0.254829586 : f32
    %297 = vector.broadcast %cst_124 : f32 to vector<16x16xf32>
    %298 = arith.addf %296, %297 : vector<16x16xf32>
    %299 = arith.mulf %298, %285 : vector<16x16xf32>
    %300 = arith.mulf %279, %279 : vector<16x16xf32>
    %cst_125 = arith.constant 0.000000e+00 : f32
    %301 = vector.broadcast %cst_125 : f32 to vector<16x16xf32>
    %302 = arith.subf %301, %300 : vector<16x16xf32>
    %303 = math.exp %302 : vector<16x16xf32>
    %304 = arith.mulf %299, %303 : vector<16x16xf32>
    %cst_126 = arith.constant 0.000000e+00 : f32
    %305 = vector.broadcast %cst_126 : f32 to vector<16x16xf32>
    %306 = arith.cmpf olt, %278, %305 : vector<16x16xf32>
    %cst_127 = arith.constant 1.000000e+00 : f32
    %307 = vector.broadcast %cst_127 : f32 to vector<16x16xf32>
    %308 = arith.subf %304, %307 : vector<16x16xf32>
    %cst_128 = arith.constant 1.000000e+00 : f32
    %309 = vector.broadcast %cst_128 : f32 to vector<16x16xf32>
    %310 = arith.subf %309, %304 : vector<16x16xf32>
    %311 = arith.select %306, %308, %310 : vector<16x16xi1>, vector<16x16xf32>
    %cst_129 = arith.constant 1.000000e+00 : f32
    %312 = vector.broadcast %cst_129 : f32 to vector<16x16xf32>
    %313 = arith.addf %312, %311 : vector<16x16xf32>
    %314 = arith.mulf %276, %313 : vector<16x16xf32>
    %c0_130 = arith.constant 0 : index
    %c0_131 = arith.constant 0 : index
    %315 = vector.load %arg7[%c0_130, %c0_131] : memref<16x16xf32, #tpu.memory_space<vmem>>, vector<16x16xf32>
    tpu.vector_store %arg7[%c0_130, %c0_131], %314 {strides = array<i32>} : memref<16x16xf32, #tpu.memory_space<vmem>>, vector<16x16xf32>,
    return
  }
  func.func @transform_0(%arg0: i32) -> (i32, i32) {
    %c0_i32 = arith.constant 0 : i32
    %c0_i32_0 = arith.constant 0 : i32
    return %arg0, %c0_i32 : i32, i32
  }
  func.func @transform_1(%arg0: i32) -> (i32, i32) {
    %c0_i32 = arith.constant 0 : i32
    %c0_i32_0 = arith.constant 0 : i32
    return %arg0, %c0_i32 : i32, i32
  }
  func.func @transform_2(%arg0: i32) -> (i32, i32) {
    %c0_i32 = arith.constant 0 : i32
    %c0_i32_0 = arith.constant 0 : i32
    %c0_i32_1 = arith.constant 0 : i32
    return %c0_i32, %c0_i32_0 : i32, i32
  }
  func.func @transform_3(%arg0: i32) -> (i32, i32) {
    %c0_i32 = arith.constant 0 : i32
    %c0_i32_0 = arith.constant 0 : i32
    %c0_i32_1 = arith.constant 0 : i32
    return %c0_i32, %c0_i32_0 : i32, i32
  }
  func.func @transform_4(%arg0: i32) -> (i32, i32, i32) {
    %c0_i32 = arith.constant 0 : i32
    %c0_i32_0 = arith.constant 0 : i32
    %c0_i32_1 = arith.constant 0 : i32
    %c0_i32_2 = arith.constant 0 : i32
    return %c0_i32, %c0_i32_0, %c0_i32_1 : i32, i32, i32
  }
  func.func @transform_5(%arg0: i32) -> (i32, i32) {
    %c0_i32 = arith.constant 0 : i32
    %c0_i32_0 = arith.constant 0 : i32
    %c0_i32_1 = arith.constant 0 : i32
    return %c0_i32, %c0_i32_0 : i32, i32
  }
  func.func @transform_6(%arg0: i32) -> (i32, i32) {
    %c0_i32 = arith.constant 0 : i32
    %c0_i32_0 = arith.constant 0 : i32
    return %arg0, %c0_i32 : i32, i32
  }
}

</mosaic_0001>

<bundles_post_ra>
// kernel: tpu_custom_call.1
= control target key start
LH: loop header
LB: loop body
LE: loop exit
PB: predicated region body
PF: predicated region fallthrough
CT: control target
= control target key end

     0   :  { %11 = vsyncpa [#allocation3], 0  ;;  %s1920_s21 = smov 0   ;;  %s2119_s0 = inlined_call_operand.vmem [shape: f32[32,8], index: 0, kind: input, shape index: {}]   ;;  %s2120_s1 = inlined_call_operand.vmem [shape: f32[32,8], index: 1, kind: input, shape index: {}]   ;;  %s2121_s2 = inlined_call_operand.vmem [shape: f32[8,16], index: 2, kind: input, shape index: {}]   ;;  %s2122_s3 = inlined_call_operand.vmem [shape: f32[8,16], index: 3, kind: input, shape index: {}]   ;;  %s2123_s4 = inlined_call_operand.hbm [shape: f32[8,16,16], index: 4, kind: input, shape index: {}]   ;;  %s2124_s5 = inlined_call_operand.vmem [shape: f32[9,16], index: 5, kind: input, shape index: {}]   ;;  %s2125_s6 = inlined_call_operand.vmem [shape: f32[32,16], index: 6, kind: output, shape index: {}]  }
   0x1 LB: > { %s1633_s22 = sadd.s32 4294967295, %s1880_s21   ;;  %p1635_p0 = scmp.ge.s32.totalorder %s1880_s21, 1  ;;  %s1880_s21 = sphi %s1920_s21, %s17_s21  }
   0x2   : > { %p184_p1 = scmp.lt.s32.totalorder %s1880_s21, 3  ;;  %s1882_s23 = smov [#allocation2]  }
   0x3   : > { %s202_s24 = sshll.u32 %s1882_s23, 4  ;;  %p1932_p3 = scmp.eq.s32.totalorder %s1633_s22, 0  ;;  %s203_s24 = int_to_ptr.vmem [resolvable:$true] %s202_s24 }
   0x4   : > { %p1928_p2 = pnand %p1635_p0, %p184_p1  ;;  %s1855_s27 = scalar_lea.vmem %s203_s24, 2048 }
   0x5   : > { %p1856_p7 = scmp.ne.s32.totalorder %s203_s24, %s1855_s27  ;;  %p1863_p10 = scmp.lt.s32.totalorder %s203_s24, %s203_s24 }
   0x6   : > { %p1787_p4 = pneg %p1928_p2  ;;  %p1864_p11 = scmp.lt.s32.totalorder %s1855_s27, %s1855_s27 }
   0x8   : > { %p1788_p5 = pnand %p1932_p3, %p1787_p4  ;;  %p1865_p12 = por %p1864_p11, %p1863_p10 }
   0xa   : > { %p1846_p6 = pneg %p1788_p5 }
   0xc   : > { %p1858_p8 = pnand %p1856_p7, %p1846_p6 }
   0xe   : > { %p1859_p9 = pneg %p1858_p8 }
  0x10   : > { %p1866_p13 = pnand %p1865_p12, %p1859_p9 }
  0x12   : > { %1869 = shalt.err (!%p1866_p13)
}
  0x13   : > { %s1883_s28 = smov 128   ;;  %s1884_s29 = smov 8  }
  0x14   : > { %1790 = dma.hbm_to_vmem [thread:$0]  (!%p1788_p5), %s2123_s4, 2048, %s203_s24, [#allocation3], %s1883_s28, %s1883_s28, %s1884_s29  }
  0x15   : > { %239 = sbr.rel (%p1928_p2) target bundleno = 1309 (0x51d), region = 44 }
  0x1a   : > { %1875 = dma.done.wait (%p1932_p3), [#allocation3], 2048  }
  0x1b   : > { %1877 = vsyncadd (%p1932_p3), [#allocation3], 4294965248  ;;  %s1640_s8 = sshll.u32 %s1633_s22, 1  ;;  %vm334_vm0 = vcmask 64512   ;;  %v333_v0 = vld [vmem:[%s2122_s3] sm:$0xff]  ;;  %v520_v6 = vld [vmem:[#allocation2 + $0x8] sm:$0xff]  ;;  %v294_v10 = vlaneseq }
  0x1c   : > { %p275_p0 = scmp.lt.s32.totalorder %s1640_s8, 3  ;;  %v330_v1 = vld [vmem:[%s2121_s2] sm:$0xff]  ;;  %1717 = vmatprep.subr.mxu0 %v333_v0  ;;  %v523_v8 = vld [vmem:[#allocation2 + $0x48] sm:$0xff]  ;;  %vm524_vm1 = vcmask 130048   ;;  %v769_v45 = vld [vmem:[#allocation2 + $0x18] sm:$0xff] }
  0x1d   : > { %1722 = vmatprep.subr.mxu1 %v330_v1  ;;  %1718 = vmatpush3.msra.mxu0 %v333_v0  ;;  %v519_v7 = vld [vmem:[#allocation2] sm:$0xff]  ;;  %v1965_v11 = vshrl.u32 %v294_v10, 7  ;;  %v1976_v25 = vand.u32 127, %v294_v10  ;;  %v768_v46 = vld [vmem:[#allocation2 + $0x10] sm:$0xff]  ;;  %v772_v47 = vld [vmem:[#allocation2 + $0x58] sm:$0xff] }
  0x1e   : > { %s2137_s8 = smov (!%p275_p0, %s1640_s8), 3  ;;  %1723 = vmatpush3.msra.mxu1 %v330_v1  ;;  %1727 = vmatprep.subr.mxu0 %v523_v8  ;;  %v522_v9 = vld [vmem:[#allocation2 + $0x40] sm:$0xff]  ;;  %v771_v48 = vld [vmem:[#allocation2 + $0x50] sm:$0xff]  ;;  %v1672_v30 = vld [vmem:[%s2124_s5 + $0x8] ss:$0 sm:$0xff] }
  0x1f   : > { %s1949_s9 = sshll.u32 %s2137_s8, 3  ;;  %1734 = vmatprep.subr.mxu1 %v520_v6  ;;  %v499_v12 = vsub.s32 0, %v1965_v11  ;;  %v1971_v13 = vld [vmem:[%s2124_s5] sm:$0xff]  ;;  %v296_v14 = vadd.s32 8, %v1965_v11  ;;  %v303_v21 = vand.u32 7, %v1965_v11  ;;  %vm505_vm2 = vcmp.lt.s32.totalorder %v1965_v11, 1 }
  0x20   : > { %s284_s12 = scalar_lea.vmem %s2120_s1, %s1949_s9  ;;  %s278_s19 = scalar_lea.vmem %s2119_s0, %s1949_s9  ;;  %vm512_vm3 = vcmp.lt.s32.totalorder %v1965_v11, 7  ;;  %vm327_vm8 = vcmp.lt.s32.totalorder %v1976_v25, 8  ;;  %v689_v49 = vsub.s32 1, %v1965_v11  ;;  %v695_v50 = vsub.s32 5, %v1965_v11 }
  0x21   : > { %v331_v2 = vld [vmem:[%s284_s12] sm:$0xff]  ;;  %v332_v3 = vld [vmem:[%s284_s12 + $0x8] sm:$0xff]  ;;  %v500_v15 = vrot.slane %v1971_v13, %v499_v12  ;;  %v310_v22 = vand.u32 7, %v296_v14  ;;  %vm1980_vm4 = vcmp.ne.s32.totalorder %v303_v21, 0  ;;  %vm1984_vm5 = vcmp.ne.s32.totalorder %v303_v21, 7  ;;  %s290_s27 = scalar_lea.vmem %s2125_s6, %s1949_s9 }
  0x22   : > { %v328_v4 = vld [vmem:[%s278_s19] sm:$0xff]  ;;  %v329_v5 = vld [vmem:[%s278_s19 + $0x8] sm:$0xff]  ;;  %1719 = vmatprep.mubr.msk.f32.mxu0 %vm334_vm0, %v331_v2  ;;  %v690_v52 = vrot.slane %v1971_v13, %v689_v49  ;;  %v696_v55 = vrot.slane %v1971_v13, %v695_v50  ;;  %v1433_v27 = vsub.s32 4, %v1965_v11 }
  0x23   : > { %1724 = vmatprep.mubr.msk.f32.mxu1 %vm334_vm0, %v328_v4  ;;  %1720 = vmatmul.mubr.msk.f32.vlgmr.msra.gmra.mxu0 %vm334_vm0, %v332_v3  ;;  %vm1988_vm6 = vcmp.ne.s32.totalorder %v310_v22, 0  ;;  %vm1992_vm7 = vcmp.ne.s32.totalorder %v310_v22, 7 }
  0x24   : > { %1725 = vmatmul.mubr.msk.f32.vlgmr.msra.gmra.mxu1 %vm334_vm0, %v329_v5  ;;  %1728 = vmatpush3.msra.mxu0 %v523_v8 }
  0x25   : > { %1735 = vmatpush3.msra.mxu1 %v520_v6  ;;  %1729 = vmatprep.subr.mxu0 %v522_v9 }
  0x26   : > { %1736 = vmatprep.subr.mxu1 %v519_v7  ;;  %1730 = vmatpush3.msra.mxu0 %v522_v9 }
  0x27   : > { %1737 = vmatpush3.msra.mxu1 %v519_v7  ;;  %1741 = vmatprep.subr.mxu0 %v772_v47 }
  0x28   : > { %1748 = vmatprep.subr.mxu1 %v769_v45 }
  0xe3   : > { %v1721_v16 = vpop.f32.mrf.mxu0 }
  0xe4   : > { %v1726_v17 = vpop.f32.mrf.mxu1 }
  0xe5   : > { %v494_v18 = vadd.f32 %v1726_v17, %v1721_v16  ;;  %v407_v19 = vpop.f32.mrf.mxu0 }
  0xe6   : > { %v488_v20 = vpop.f32.mrf.mxu1 }
  0xe7   : > { %v502_v23 = vadd.f32 %v500_v15, %v494_v18  ;;  %v489_v24 = vadd.f32 %v488_v20, %v407_v19 }
  0xe9   : > { %v501_v26 = vadd.f32 %v500_v15, %v489_v24  ;;  %v504_v31 = vrot.slane %v502_v23, 7  ;;  %v511_v32 = vrot.slane %v502_v23, 1 }
  0xeb   : > { %v503_v33 = vrot.slane %v501_v26, 7  ;;  %v510_v34 = vrot.slane %v501_v26, 1  ;;  %1738 = vmatprep.mubr.msk.f32.mxu1 %vm524_vm1, %v501_v26 }
  0xec   : > { %1739 = vmatmul.mubr.msk.f32.vlgmr.msra.gmra.mxu1 %vm524_vm1, %v502_v23 }
  0xed   : > { %v507_v35 = vsel %vm505_vm2, %v504_v31, %v503_v33  ;;  %v513_v36 = vsel %vm512_vm3, %v510_v34, %v511_v32  ;;  %v506_v37 = vsel %vm505_vm2, %v503_v33, %v504_v31  ;;  %v514_v38 = vsel %vm512_vm3, %v511_v32, %v510_v34  ;;  %1749 = vmatpush3.msra.mxu1 %v769_v45 }
  0xee   : > { %v508_v39 = vsel %vm1980_vm4, %v507_v35, 0.0  ;;  %v515_v40 = vsel %vm1984_vm5, %v513_v36, 0.0  ;;  %v509_v41 = vsel %vm1988_vm6, %v506_v37, 0.0  ;;  %v516_v42 = vsel %vm1992_vm7, %v514_v38, 0.0  ;;  %1750 = vmatprep.subr.mxu1 %v768_v46 }
  0xef   : > { %v517_v43 = vsel %vm327_vm8, %v515_v40, %v508_v39  ;;  %v518_v44 = vsel %vm327_vm8, %v516_v42, %v509_v41  ;;  %1751 = vmatpush3.msra.mxu1 %v768_v46 }
  0xf0   : > { %1731 = vmatprep.mubr.msk.f32.mxu0 %vm524_vm1, %v517_v43 }
  0xf1   : > { %1732 = vmatmul.mubr.msk.f32.vlgmr.msra.gmra.mxu0 %vm524_vm1, %v518_v44 }
  0xf2   : > { %1742 = vmatpush3.msra.mxu0 %v772_v47 }
  0xf3   : > { %1743 = vmatprep.subr.mxu0 %v771_v48 }
  0xf4   : > { %1744 = vmatpush3.msra.mxu0 %v771_v48 }
 0x1ac   : > { %v1740_v51 = vpop.f32.mrf.mxu1 }
 0x1ae   : > { %v678_v56 = vpop.f32.mrf.mxu1 }
 0x1b1   : > { %v1733_v53 = vpop.f32.mrf.mxu0 }
 0x1b2   : > { %v684_v54 = vadd.f32 %v1740_v51, %v1733_v53 }
 0x1b3   : > { %v597_v57 = vpop.f32.mrf.mxu0 }
 0x1b4   : > { %v692_v58 = vmul.f32 %v690_v52, %v684_v54  ;;  %v679_v59 = vadd.f32 %v678_v56, %v597_v57 }
 0x1b6   : > { %v698_v60 = vadd.f32 %v696_v55, %v692_v58  ;;  %v691_v61 = vmul.f32 %v690_v52, %v679_v59 }
 0x1b8   : > { %v702_v62 = vmul.f32 0.70710677, %v698_v60  ;;  %v697_v63 = vadd.f32 %v696_v55, %v691_v61  ;;  %v700_v50 = vmul.f32 0.5, %v698_v60 }
 0x1ba   : > { %v704_v0 = vand.u32 2147483647, %v702_v62  ;;  %v701_v1 = vmul.f32 0.70710677, %v697_v63  ;;  %vm742_vm9 = vcmp.lt.f32.partialorder %v702_v62, 0.0  ;;  %v699_v53 = vmul.f32 0.5, %v697_v63 }
 0x1bc   : > { %v706_v2 = vmul.f32 0.3275911, %v704_v0  ;;  %v703_v3 = vand.u32 2147483647, %v701_v1  ;;  %v732_v7 = vmul.f32 %v704_v0, %v704_v0  ;;  %vm741_vm10 = vcmp.lt.f32.partialorder %v701_v1, 0.0 }
 0x1be   : > { %v708_v4 = vadd.f32 1.0, %v706_v2  ;;  %v705_v5 = vmul.f32 0.3275911, %v703_v3  ;;  %v731_v8 = vmul.f32 %v703_v3, %v703_v3  ;;  %v734_v9 = vsub.f32 0.0, %v732_v7  ;;  %v1016_v7 = vld [vmem:[#allocation2 + $0x20] sm:$0xff] }
 0x1c0   : > { %1804 = vrcp.f32 %v708_v4  ;;  %v707_v6 = vadd.f32 1.0, %v705_v5  ;;  %v733_v12 = vsub.f32 0.0, %v731_v8  ;;  %v737_v15 = vmul.f32 1.442695, %v734_v9  ;;  %v1020_v8 = vld [vmem:[#allocation2 + $0x68] sm:$0xff]  ;;  %v1019_v9 = vld [vmem:[#allocation2 + $0x60] sm:$0xff] }
 0x1c1   : > { %1755 = vmatprep.subr.mxu0 %v1020_v8 }
 0x1c2   : > { %1806 = vrcp.f32 %v707_v6  ;;  %v735_v18 = vmul.f32 1.442695, %v733_v12  ;;  %v1017_v6 = vld [vmem:[#allocation2 + $0x28] sm:$0xff]  ;;  %v943_v12 = vsub.s32 6, %v1965_v11 }
 0x1c3   : > { %1808 = vpow2.f32 %v737_v15  ;;  %1762 = vmatprep.subr.mxu1 %v1017_v6 }
 0x1c4   : > { %1810 = vpow2.f32 %v735_v18  ;;  %v944_v18 = vrot.slane %v1971_v13, %v943_v12 }
 0x1cd   : > { %v1805_v10 = vpop.eup %1804 }
 0x1ce   : > { %v714_v14 = vmul.f32 1.0614054, %v1805_v10 }
 0x1cf   : > { %v1807_v16 = vpop.eup %1806 }
 0x1d0   : > { %v716_v17 = vadd.f32 -1.4531521, %v714_v14  ;;  %v713_v19 = vmul.f32 1.0614054, %v1807_v16  ;;  %v1809_v38 = vpop.eup %1808 }
 0x1d1   : > { %v1811_v42 = vpop.eup %1810 }
 0x1d2   : > { %v718_v20 = vmul.f32 %v1805_v10, %v716_v17  ;;  %v715_v21 = vadd.f32 -1.4531521, %v713_v19 }
 0x1d4   : > { %v720_v22 = vadd.f32 1.4214138, %v718_v20  ;;  %v717_v23 = vmul.f32 %v1807_v16, %v715_v21 }
 0x1d6   : > { %v722_v24 = vmul.f32 %v1805_v10, %v720_v22  ;;  %v719_v26 = vadd.f32 1.4214138, %v717_v23 }
 0x1d8   : > { %v724_v31 = vadd.f32 -0.28449672, %v722_v24  ;;  %v721_v32 = vmul.f32 %v1807_v16, %v719_v26 }
 0x1da   : > { %v726_v33 = vmul.f32 %v1805_v10, %v724_v31  ;;  %v723_v34 = vadd.f32 -0.28449672, %v721_v32 }
 0x1dc   : > { %v728_v35 = vadd.f32 0.2548296, %v726_v33  ;;  %v725_v36 = vmul.f32 %v1807_v16, %v723_v34 }
 0x1de   : > { %v730_v37 = vmul.f32 %v1805_v10, %v728_v35  ;;  %v727_v39 = vadd.f32 0.2548296, %v725_v36  ;;  %v937_v10 = vsub.s32 2, %v1965_v11 }
 0x1e0   : > { %v740_v40 = vmul.f32 %v1809_v38, %v730_v37  ;;  %v729_v41 = vmul.f32 %v1807_v16, %v727_v39  ;;  %v938_v15 = vrot.slane %v1971_v13, %v937_v10 }
 0x1e2   : > { %v1655_v43 = vadd.f32 -1.0, %v740_v40  ;;  %v746_v44 = vsub.f32 1.0, %v740_v40  ;;  %v739_v45 = vmul.f32 %v1811_v42, %v729_v41 }
 0x1e4   : > { %v748_v46 = vsel %vm742_vm9, %v1655_v43, %v746_v44  ;;  %v1654_v48 = vadd.f32 -1.0, %v739_v45  ;;  %v745_v49 = vsub.f32 1.0, %v739_v45 }
 0x1e5   : > { %v750_v47 = vadd.f32 1.0, %v748_v46 }
 0x1e6   : > { %v747_v51 = vsel %vm741_vm10, %v1654_v48, %v745_v49 }
 0x1e7   : > { %v752_v52 = vmul.f32 %v750_v47, %v700_v50  ;;  %v749_v54 = vadd.f32 1.0, %v747_v51 }
 0x1e9   : > { %v751_v55 = vmul.f32 %v749_v54, %v699_v53  ;;  %v754_v57 = vrot.slane %v752_v52, 7  ;;  %v760_v59 = vrot.slane %v752_v52, 1 }
 0x1eb   : > { %1752 = vmatprep.mubr.msk.f32.mxu1 %vm524_vm1, %v751_v55  ;;  %v753_v56 = vrot.slane %v751_v55, 7  ;;  %v759_v58 = vrot.slane %v751_v55, 1 }
 0x1ec   : > { %1753 = vmatmul.mubr.msk.f32.vlgmr.msra.gmra.mxu1 %vm524_vm1, %v752_v52 }
 0x1ed   : > { %v756_v61 = vsel %vm505_vm2, %v754_v57, %v753_v56  ;;  %v761_v60 = vsel %vm512_vm3, %v759_v58, %v760_v59  ;;  %v755_v62 = vsel %vm505_vm2, %v753_v56, %v754_v57  ;;  %v762_v63 = vsel %vm512_vm3, %v760_v59, %v759_v58  ;;  %1763 = vmatpush3.msra.mxu1 %v1017_v6 }
 0x1ee   : > { %v757_v0 = vsel %vm1980_vm4, %v756_v61, 0.0  ;;  %v763_v1 = vsel %vm1984_vm5, %v761_v60, 0.0  ;;  %v758_v2 = vsel %vm1988_vm6, %v755_v62, 0.0  ;;  %v764_v3 = vsel %vm1992_vm7, %v762_v63, 0.0  ;;  %1764 = vmatprep.subr.mxu1 %v1016_v7 }
 0x1ef   : > { %v765_v4 = vsel %vm327_vm8, %v763_v1, %v757_v0  ;;  %v766_v5 = vsel %vm327_vm8, %v764_v3, %v758_v2  ;;  %1765 = vmatpush3.msra.mxu1 %v1016_v7 }
 0x1f0   : > { %1745 = vmatprep.mubr.msk.f32.mxu0 %vm524_vm1, %v765_v4 }
 0x1f1   : > { %1746 = vmatmul.mubr.msk.f32.vlgmr.msra.gmra.mxu0 %vm524_vm1, %v766_v5 }
 0x1f2   : > { %1756 = vmatpush3.msra.mxu0 %v1020_v8 }
 0x1f3   : > { %1757 = vmatprep.subr.mxu0 %v1019_v9 }
 0x1f4   : > { %1758 = vmatpush3.msra.mxu0 %v1019_v9 }
 0x2ac   : > { %v1754_v14 = vpop.f32.mrf.mxu1 }
 0x2ae   : > { %v926_v19 = vpop.f32.mrf.mxu1 }
 0x2b1   : > { %v1747_v16 = vpop.f32.mrf.mxu0 }
 0x2b2   : > { %v932_v17 = vadd.f32 %v1754_v14, %v1747_v16 }
 0x2b3   : > { %v845_v20 = vpop.f32.mrf.mxu0 }
 0x2b4   : > { %v940_v21 = vmul.f32 %v938_v15, %v932_v17  ;;  %v927_v22 = vadd.f32 %v926_v19, %v845_v20 }
 0x2b6   : > { %v946_v23 = vadd.f32 %v944_v18, %v940_v21  ;;  %v939_v24 = vmul.f32 %v938_v15, %v927_v22 }
 0x2b8   : > { %v950_v26 = vmul.f32 0.70710677, %v946_v23  ;;  %v945_v31 = vadd.f32 %v944_v18, %v939_v24  ;;  %v948_v12 = vmul.f32 0.5, %v946_v23 }
 0x2ba   : > { %v952_v32 = vand.u32 2147483647, %v950_v26  ;;  %v949_v33 = vmul.f32 0.70710677, %v945_v31  ;;  %vm990_vm11 = vcmp.lt.f32.partialorder %v950_v26, 0.0  ;;  %v947_v16 = vmul.f32 0.5, %v945_v31 }
 0x2bc   : > { %v954_v34 = vmul.f32 0.3275911, %v952_v32  ;;  %v951_v35 = vand.u32 2147483647, %v949_v33  ;;  %v980_v39 = vmul.f32 %v952_v32, %v952_v32  ;;  %vm989_vm12 = vcmp.lt.f32.partialorder %v949_v33, 0.0 }
 0x2be   : > { %v956_v36 = vadd.f32 1.0, %v954_v34  ;;  %v953_v37 = vmul.f32 0.3275911, %v951_v35  ;;  %v979_v40 = vmul.f32 %v951_v35, %v951_v35  ;;  %v982_v41 = vsub.f32 0.0, %v980_v39  ;;  %v1264_v39 = vld [vmem:[#allocation2 + $0x30] sm:$0xff] }
 0x2c0   : > { %1812 = vrcp.f32 %v956_v36  ;;  %v955_v38 = vadd.f32 1.0, %v953_v37  ;;  %v981_v43 = vsub.f32 0.0, %v979_v40  ;;  %v985_v45 = vmul.f32 1.442695, %v982_v41  ;;  %v1268_v40 = vld [vmem:[#allocation2 + $0x78] sm:$0xff]  ;;  %v1267_v41 = vld [vmem:[#allocation2 + $0x70] sm:$0xff] }
 0x2c1   : > { %1769 = vmatprep.subr.mxu0 %v1268_v40 }
 0x2c2   : > { %1814 = vrcp.f32 %v955_v38  ;;  %v983_v48 = vmul.f32 1.442695, %v981_v43  ;;  %v1265_v38 = vld [vmem:[#allocation2 + $0x38] sm:$0xff]  ;;  %v1191_v43 = vsub.s32 7, %v1965_v11 }
 0x2c3   : > { %1816 = vpow2.f32 %v985_v45  ;;  %1776 = vmatprep.subr.mxu1 %v1265_v38 }
 0x2c4   : > { %1818 = vpow2.f32 %v983_v48  ;;  %v1192_v48 = vrot.slane %v1971_v13, %v1191_v43 }
 0x2cd   : > { %v1813_v42 = vpop.eup %1812 }
 0x2ce   : > { %v962_v44 = vmul.f32 1.0614054, %v1813_v42 }
 0x2cf   : > { %v1815_v46 = vpop.eup %1814 }
 0x2d0   : > { %v964_v47 = vadd.f32 -1.4531521, %v962_v44  ;;  %v961_v49 = vmul.f32 1.0614054, %v1815_v46  ;;  %v1817_v63 = vpop.eup %1816 }
 0x2d1   : > { %v1819_v3 = vpop.eup %1818 }
 0x2d2   : > { %v966_v50 = vmul.f32 %v1813_v42, %v964_v47  ;;  %v963_v51 = vadd.f32 -1.4531521, %v961_v49 }
 0x2d4   : > { %v968_v52 = vadd.f32 1.4214138, %v966_v50  ;;  %v965_v53 = vmul.f32 %v1815_v46, %v963_v51 }
 0x2d6   : > { %v970_v54 = vmul.f32 %v1813_v42, %v968_v52  ;;  %v967_v55 = vadd.f32 1.4214138, %v965_v53 }
 0x2d8   : > { %v972_v56 = vadd.f32 -0.28449672, %v970_v54  ;;  %v969_v57 = vmul.f32 %v1815_v46, %v967_v55 }
 0x2da   : > { %v974_v58 = vmul.f32 %v1813_v42, %v972_v56  ;;  %v971_v59 = vadd.f32 -0.28449672, %v969_v57 }
 0x2dc   : > { %v976_v61 = vadd.f32 0.2548296, %v974_v58  ;;  %v973_v60 = vmul.f32 %v1815_v46, %v971_v59 }
 0x2de   : > { %v978_v62 = vmul.f32 %v1813_v42, %v976_v61  ;;  %v975_v0 = vadd.f32 0.2548296, %v973_v60  ;;  %v1185_v42 = vsub.s32 3, %v1965_v11 }
 0x2e0   : > { %v988_v1 = vmul.f32 %v1817_v63, %v978_v62  ;;  %v977_v2 = vmul.f32 %v1815_v46, %v975_v0  ;;  %v1186_v45 = vrot.slane %v1971_v13, %v1185_v42 }
 0x2e2   : > { %v1661_v4 = vadd.f32 -1.0, %v988_v1  ;;  %v994_v5 = vsub.f32 1.0, %v988_v1  ;;  %v987_v6 = vmul.f32 %v1819_v3, %v977_v2 }
 0x2e4   : > { %v996_v7 = vsel %vm990_vm11, %v1661_v4, %v994_v5  ;;  %v1660_v9 = vadd.f32 -1.0, %v987_v6  ;;  %v993_v10 = vsub.f32 1.0, %v987_v6 }
 0x2e5   : > { %v998_v8 = vadd.f32 1.0, %v996_v7 }
 0x2e6   : > { %v995_v14 = vsel %vm989_vm12, %v1660_v9, %v993_v10 }
 0x2e7   : > { %v1000_v15 = vmul.f32 %v998_v8, %v948_v12  ;;  %v997_v17 = vadd.f32 1.0, %v995_v14 }
 0x2e9   : > { %v999_v18 = vmul.f32 %v997_v17, %v947_v16  ;;  %v1002_v20 = vrot.slane %v1000_v15, 7  ;;  %v1008_v22 = vrot.slane %v1000_v15, 1 }
 0x2eb   : > { %1766 = vmatprep.mubr.msk.f32.mxu1 %vm524_vm1, %v999_v18  ;;  %v1001_v19 = vrot.slane %v999_v18, 7  ;;  %v1007_v21 = vrot.slane %v999_v18, 1 }
 0x2ec   : > { %1767 = vmatmul.mubr.msk.f32.vlgmr.msra.gmra.mxu1 %vm524_vm1, %v1000_v15 }
 0x2ed   : > { %v1004_v24 = vsel %vm505_vm2, %v1002_v20, %v1001_v19  ;;  %v1009_v23 = vsel %vm512_vm3, %v1007_v21, %v1008_v22  ;;  %v1003_v26 = vsel %vm505_vm2, %v1001_v19, %v1002_v20  ;;  %v1010_v31 = vsel %vm512_vm3, %v1008_v22, %v1007_v21  ;;  %1777 = vmatpush3.msra.mxu1 %v1265_v38 }
 0x2ee   : > { %v1005_v32 = vsel %vm1980_vm4, %v1004_v24, 0.0  ;;  %v1011_v33 = vsel %vm1984_vm5, %v1009_v23, 0.0  ;;  %v1006_v34 = vsel %vm1988_vm6, %v1003_v26, 0.0  ;;  %v1012_v35 = vsel %vm1992_vm7, %v1010_v31, 0.0  ;;  %1778 = vmatprep.subr.mxu1 %v1264_v39 }
 0x2ef   : > { %v1013_v36 = vsel %vm327_vm8, %v1011_v33, %v1005_v32  ;;  %v1014_v37 = vsel %vm327_vm8, %v1012_v35, %v1006_v34  ;;  %1779 = vmatpush3.msra.mxu1 %v1264_v39 }
 0x2f0   : > { %1759 = vmatprep.mubr.msk.f32.mxu0 %vm524_vm1, %v1013_v36 }
 0x2f1   : > { %1760 = vmatmul.mubr.msk.f32.vlgmr.msra.gmra.mxu0 %vm524_vm1, %v1014_v37 }
 0x2f2   : > { %1770 = vmatpush3.msra.mxu0 %v1268_v40 }
 0x2f3   : > { %1771 = vmatprep.subr.mxu0 %v1267_v41 }
 0x2f4   : > { %1772 = vmatpush3.msra.mxu0 %v1267_v41 }
 0x3ac   : > { %v1768_v44 = vpop.f32.mrf.mxu1 }
 0x3ae   : > { %v1174_v49 = vpop.f32.mrf.mxu1 }
 0x3b1   : > { %v1761_v46 = vpop.f32.mrf.mxu0 }
 0x3b2   : > { %v1180_v47 = vadd.f32 %v1768_v44, %v1761_v46 }
 0x3b3   : > { %v1093_v50 = vpop.f32.mrf.mxu0 }
 0x3b4   : > { %v1188_v51 = vmul.f32 %v1186_v45, %v1180_v47  ;;  %v1175_v52 = vadd.f32 %v1174_v49, %v1093_v50 }
 0x3b6   : > { %v1194_v53 = vadd.f32 %v1192_v48, %v1188_v51  ;;  %v1187_v54 = vmul.f32 %v1186_v45, %v1175_v52 }
 0x3b8   : > { %v1198_v55 = vmul.f32 0.70710677, %v1194_v53  ;;  %v1193_v56 = vadd.f32 %v1192_v48, %v1187_v54  ;;  %v1196_v43 = vmul.f32 0.5, %v1194_v53 }
 0x3ba   : > { %v1200_v57 = vand.u32 2147483647, %v1198_v55  ;;  %v1197_v58 = vmul.f32 0.70710677, %v1193_v56  ;;  %vm1238_vm13 = vcmp.lt.f32.partialorder %v1198_v55, 0.0  ;;  %v1195_v46 = vmul.f32 0.5, %v1193_v56 }
 0x3bc   : > { %v1202_v59 = vmul.f32 0.3275911, %v1200_v57  ;;  %v1199_v61 = vand.u32 2147483647, %v1197_v58  ;;  %v1228_v0 = vmul.f32 %v1200_v57, %v1200_v57  ;;  %vm1237_vm14 = vcmp.lt.f32.partialorder %v1197_v58, 0.0 }
 0x3be   : > { %v1204_v60 = vadd.f32 1.0, %v1202_v59  ;;  %v1201_v62 = vmul.f32 0.3275911, %v1199_v61  ;;  %v1227_v1 = vmul.f32 %v1199_v61, %v1199_v61  ;;  %v1230_v2 = vsub.f32 0.0, %v1228_v0 }
 0x3c0   : > { %1820 = vrcp.f32 %v1204_v60  ;;  %v1203_v63 = vadd.f32 1.0, %v1201_v62  ;;  %v1229_v4 = vsub.f32 0.0, %v1227_v1  ;;  %v1233_v6 = vmul.f32 1.442695, %v1230_v2 }
 0x3c2   : > { %1822 = vrcp.f32 %v1203_v63  ;;  %v1231_v9 = vmul.f32 1.442695, %v1229_v4  ;;  %v1434_v63 = vrot.slane %v1971_v13, %v1433_v27 }
 0x3c3   : > { %1824 = vpow2.f32 %v1233_v6 }
 0x3c4   : > { %1826 = vpow2.f32 %v1231_v9 }
 0x3cd   : > { %v1821_v3 = vpop.eup %1820 }
 0x3ce   : > { %v1210_v5 = vmul.f32 1.0614054, %v1821_v3 }
 0x3cf   : > { %v1823_v7 = vpop.eup %1822 }
 0x3d0   : > { %v1212_v8 = vadd.f32 -1.4531521, %v1210_v5  ;;  %v1209_v10 = vmul.f32 1.0614054, %v1823_v7  ;;  %v1825_v31 = vpop.eup %1824 }
 0x3d1   : > { %v1827_v35 = vpop.eup %1826 }
 0x3d2   : > { %v1214_v12 = vmul.f32 %v1821_v3, %v1212_v8  ;;  %v1211_v14 = vadd.f32 -1.4531521, %v1209_v10 }
 0x3d4   : > { %v1216_v15 = vadd.f32 1.4214138, %v1214_v12  ;;  %v1213_v16 = vmul.f32 %v1823_v7, %v1211_v14 }
 0x3d6   : > { %v1218_v17 = vmul.f32 %v1821_v3, %v1216_v15  ;;  %v1215_v18 = vadd.f32 1.4214138, %v1213_v16 }
 0x3d8   : > { %v1220_v19 = vadd.f32 -0.28449672, %v1218_v17  ;;  %v1217_v20 = vmul.f32 %v1823_v7, %v1215_v18 }
 0x3da   : > { %v1222_v21 = vmul.f32 %v1821_v3, %v1220_v19  ;;  %v1219_v22 = vadd.f32 -0.28449672, %v1217_v20 }
 0x3dc   : > { %v1224_v24 = vadd.f32 0.2548296, %v1222_v21  ;;  %v1221_v23 = vmul.f32 %v1823_v7, %v1219_v22 }
 0x3de   : > { %v1226_v26 = vmul.f32 %v1821_v3, %v1224_v24  ;;  %v1223_v32 = vadd.f32 0.2548296, %v1221_v23 }
 0x3e0   : > { %v1236_v33 = vmul.f32 %v1825_v31, %v1226_v26  ;;  %v1225_v34 = vmul.f32 %v1823_v7, %v1223_v32 }
 0x3e2   : > { %v1667_v36 = vadd.f32 -1.0, %v1236_v33  ;;  %v1242_v37 = vsub.f32 1.0, %v1236_v33  ;;  %v1235_v38 = vmul.f32 %v1827_v35, %v1225_v34 }
 0x3e4   : > { %v1244_v39 = vsel %vm1238_vm13, %v1667_v36, %v1242_v37  ;;  %v1666_v41 = vadd.f32 -1.0, %v1235_v38  ;;  %v1241_v42 = vsub.f32 1.0, %v1235_v38 }
 0x3e5   : > { %v1246_v40 = vadd.f32 1.0, %v1244_v39 }
 0x3e6   : > { %v1243_v44 = vsel %vm1237_vm14, %v1666_v41, %v1241_v42 }
 0x3e7   : > { %v1248_v45 = vmul.f32 %v1246_v40, %v1196_v43  ;;  %v1245_v47 = vadd.f32 1.0, %v1243_v44 }
 0x3e9   : > { %v1247_v48 = vmul.f32 %v1245_v47, %v1195_v46  ;;  %v1250_v50 = vrot.slane %v1248_v45, 7  ;;  %v1256_v52 = vrot.slane %v1248_v45, 1 }
 0x3eb   : > { %1780 = vmatprep.mubr.msk.f32.mxu1 %vm524_vm1, %v1247_v48  ;;  %v1249_v49 = vrot.slane %v1247_v48, 7  ;;  %v1255_v51 = vrot.slane %v1247_v48, 1 }
 0x3ec   : > { %1781 = vmatmul.mubr.msk.f32.vlgmr.msra.gmra.mxu1 %vm524_vm1, %v1248_v45 }
 0x3ed   : > { %v1252_v54 = vsel %vm505_vm2, %v1250_v50, %v1249_v49  ;;  %v1257_v53 = vsel %vm512_vm3, %v1255_v51, %v1256_v52  ;;  %v1251_v55 = vsel %vm505_vm2, %v1249_v49, %v1250_v50  ;;  %v1258_v56 = vsel %vm512_vm3, %v1256_v52, %v1255_v51 }
 0x3ee   : > { %v1253_v57 = vsel %vm1980_vm4, %v1252_v54, 0.0  ;;  %v1259_v58 = vsel %vm1984_vm5, %v1257_v53, 0.0  ;;  %v1254_v59 = vsel %vm1988_vm6, %v1251_v55, 0.0  ;;  %v1260_v61 = vsel %vm1992_vm7, %v1258_v56, 0.0 }
 0x3ef   : > { %v1261_v60 = vsel %vm327_vm8, %v1259_v58, %v1253_v57  ;;  %v1262_v62 = vsel %vm327_vm8, %v1260_v61, %v1254_v59 }
 0x3f0   : > { %1773 = vmatprep.mubr.msk.f32.mxu0 %vm524_vm1, %v1261_v60 }
 0x3f1   : > { %1774 = vmatmul.mubr.msk.f32.vlgmr.msra.gmra.mxu0 %vm524_vm1, %v1262_v62 }
 0x4ac   : > { %v1782_v28 = vpop.f32.mrf.mxu1 }
 0x4ae   : > { %v1422_v1 = vpop.f32.mrf.mxu1 }
 0x4b1   : > { %v1775_v29 = vpop.f32.mrf.mxu0 }
 0x4b2   : > { %v1428_v0 = vadd.f32 %v1782_v28, %v1775_v29 }
 0x4b3   : > { %v1341_v2 = vpop.f32.mrf.mxu0 }
 0x4b4   : > { %v1436_v3 = vmul.f32 %v1434_v63, %v1428_v0  ;;  %v1423_v25 = vadd.f32 %v1422_v1, %v1341_v2 }
 0x4b6   : > { %v1442_v4 = vadd.f32 %v1672_v30, %v1436_v3  ;;  %v1435_v5 = vmul.f32 %v1434_v63, %v1423_v25 }
 0x4b8   : > { %v1446_v6 = vmul.f32 0.70710677, %v1442_v4  ;;  %v1441_v7 = vadd.f32 %v1672_v30, %v1435_v5  ;;  %v1444_v54 = vmul.f32 0.5, %v1442_v4 }
 0x4ba   : > { %v1448_v8 = vand.u32 2147483647, %v1446_v6  ;;  %v1445_v9 = vmul.f32 0.70710677, %v1441_v7  ;;  %vm1486_vm15 = vcmp.lt.f32.partialorder %v1446_v6, 0.0  ;;  %v1443_v59 = vmul.f32 0.5, %v1441_v7 }
 0x4bc   : > { %v1450_v11 = vmul.f32 0.3275911, %v1448_v8  ;;  %v1447_v10 = vand.u32 2147483647, %v1445_v9  ;;  %v1476_v15 = vmul.f32 %v1448_v8, %v1448_v8  ;;  %vm1485_vm0 = vcmp.lt.f32.partialorder %v1445_v9, 0.0 }
 0x4be   : > { %v1452_v12 = vadd.f32 1.0, %v1450_v11  ;;  %v1449_v13 = vmul.f32 0.3275911, %v1447_v10  ;;  %v1475_v16 = vmul.f32 %v1447_v10, %v1447_v10  ;;  %v1478_v17 = vsub.f32 0.0, %v1476_v15 }
 0x4c0   : > { %1828 = vrcp.f32 %v1452_v12  ;;  %v1451_v14 = vadd.f32 1.0, %v1449_v13  ;;  %v1477_v19 = vsub.f32 0.0, %v1475_v16  ;;  %v1481_v21 = vmul.f32 1.442695, %v1478_v17 }
 0x4c2   : > { %1830 = vrcp.f32 %v1451_v14  ;;  %v1479_v26 = vmul.f32 1.442695, %v1477_v19 }
 0x4c3   : > { %1832 = vpow2.f32 %v1481_v21 }
 0x4c4   : > { %1834 = vpow2.f32 %v1479_v26 }
 0x4cd   : > { %v1829_v18 = vpop.eup %1828 }
 0x4ce   : > { %v1458_v20 = vmul.f32 1.0614054, %v1829_v18 }
 0x4cf   : > { %v1831_v22 = vpop.eup %1830 }
 0x4d0   : > { %v1460_v24 = vadd.f32 -1.4531521, %v1458_v20  ;;  %v1457_v23 = vmul.f32 1.0614054, %v1831_v22  ;;  %v1833_v44 = vpop.eup %1832 }
 0x4d1   : > { %v1835_v48 = vpop.eup %1834 }
 0x4d2   : > { %v1462_v31 = vmul.f32 %v1829_v18, %v1460_v24  ;;  %v1459_v32 = vadd.f32 -1.4531521, %v1457_v23 }
 0x4d4   : > { %v1464_v33 = vadd.f32 1.4214138, %v1462_v31  ;;  %v1461_v34 = vmul.f32 %v1831_v22, %v1459_v32 }
 0x4d6   : > { %v1466_v35 = vmul.f32 %v1829_v18, %v1464_v33  ;;  %v1463_v36 = vadd.f32 1.4214138, %v1461_v34 }
 0x4d8   : > { %v1468_v37 = vadd.f32 -0.28449672, %v1466_v35  ;;  %v1465_v38 = vmul.f32 %v1831_v22, %v1463_v36 }
 0x4da   : > { %v1470_v39 = vmul.f32 %v1829_v18, %v1468_v37  ;;  %v1467_v40 = vadd.f32 -0.28449672, %v1465_v38 }
 0x4dc   : > { %v1472_v41 = vadd.f32 0.2548296, %v1470_v39  ;;  %v1469_v42 = vmul.f32 %v1831_v22, %v1467_v40 }
 0x4de   : > { %v1474_v43 = vmul.f32 %v1829_v18, %v1472_v41  ;;  %v1471_v45 = vadd.f32 0.2548296, %v1469_v42 }
 0x4e0   : > { %v1484_v46 = vmul.f32 %v1833_v44, %v1474_v43  ;;  %v1473_v47 = vmul.f32 %v1831_v22, %v1471_v45 }
 0x4e2   : > { %v1674_v49 = vadd.f32 -1.0, %v1484_v46  ;;  %v1490_v50 = vsub.f32 1.0, %v1484_v46  ;;  %v1483_v51 = vmul.f32 %v1835_v48, %v1473_v47 }
 0x4e4   : > { %v1492_v52 = vsel %vm1486_vm15, %v1674_v49, %v1490_v50  ;;  %v1673_v55 = vadd.f32 -1.0, %v1483_v51  ;;  %v1489_v56 = vsub.f32 1.0, %v1483_v51 }
 0x4e5   : > { %v1494_v53 = vadd.f32 1.0, %v1492_v52 }
 0x4e6   : > { %v1491_v58 = vsel %vm1485_vm0, %v1673_v55, %v1489_v56 }
 0x4e7   : > { %v1496_v57 = vmul.f32 %v1494_v53, %v1444_v54  ;;  %v1493_v61 = vadd.f32 1.0, %v1491_v58 }
 0x4e9   : > { %v1500_v60 = vmul.f32 0.70710677, %v1496_v57  ;;  %v1495_v62 = vmul.f32 %v1493_v61, %v1443_v59  ;;  %v1498_v45 = vmul.f32 0.5, %v1496_v57 }
 0x4eb   : > { %v1502_v27 = vand.u32 2147483647, %v1500_v60  ;;  %v1499_v28 = vmul.f32 0.70710677, %v1495_v62  ;;  %vm1540_vm2 = vcmp.lt.f32.partialorder %v1500_v60, 0.0  ;;  %v1497_v43 = vmul.f32 0.5, %v1495_v62 }
 0x4ed   : > { %v1504_v63 = vmul.f32 0.3275911, %v1502_v27  ;;  %v1501_v29 = vand.u32 2147483647, %v1499_v28  ;;  %v1530_v2 = vmul.f32 %v1502_v27, %v1502_v27  ;;  %vm1539_vm3 = vcmp.lt.f32.partialorder %v1499_v28, 0.0 }
 0x4ef   : > { %v1506_v0 = vadd.f32 1.0, %v1504_v63  ;;  %v1503_v1 = vmul.f32 0.3275911, %v1501_v29  ;;  %v1529_v3 = vmul.f32 %v1501_v29, %v1501_v29  ;;  %v1532_v25 = vsub.f32 0.0, %v1530_v2 }
 0x4f1   : > { %1836 = vrcp.f32 %v1506_v0  ;;  %v1505_v30 = vadd.f32 1.0, %v1503_v1  ;;  %v1531_v5 = vsub.f32 0.0, %v1529_v3  ;;  %v1535_v8 = vmul.f32 1.442695, %v1532_v25 }
 0x4f3   : > { %1838 = vrcp.f32 %v1505_v30  ;;  %v1533_v10 = vmul.f32 1.442695, %v1531_v5 }
 0x4f4   : > { %1840 = vpow2.f32 %v1535_v8 }
 0x4f5   : > { %1842 = vpow2.f32 %v1533_v10 }
 0x4fe   : > { %v1837_v4 = vpop.eup %1836 }
 0x4ff   : > { %v1512_v6 = vmul.f32 1.0614054, %v1837_v4 }
 0x500   : > { %v1839_v7 = vpop.eup %1838 }
 0x501   : > { %v1514_v9 = vadd.f32 -1.4531521, %v1512_v6  ;;  %v1511_v11 = vmul.f32 1.0614054, %v1839_v7  ;;  %v1841_v26 = vpop.eup %1840 }
 0x502   : > { %v1843_v34 = vpop.eup %1842 }
 0x503   : > { %v1516_v12 = vmul.f32 %v1837_v4, %v1514_v9  ;;  %v1513_v13 = vadd.f32 -1.4531521, %v1511_v11 }
 0x505   : > { %v1518_v14 = vadd.f32 1.4214138, %v1516_v12  ;;  %v1515_v15 = vmul.f32 %v1839_v7, %v1513_v13 }
 0x507   : > { %v1520_v16 = vmul.f32 %v1837_v4, %v1518_v14  ;;  %v1517_v17 = vadd.f32 1.4214138, %v1515_v15 }
 0x509   : > { %v1522_v18 = vadd.f32 -0.28449672, %v1520_v16  ;;  %v1519_v19 = vmul.f32 %v1839_v7, %v1517_v17 }
 0x50b   : > { %v1524_v20 = vmul.f32 %v1837_v4, %v1522_v18  ;;  %v1521_v21 = vadd.f32 -0.28449672, %v1519_v19 }
 0x50d   : > { %v1526_v22 = vadd.f32 0.2548296, %v1524_v20  ;;  %v1523_v24 = vmul.f32 %v1839_v7, %v1521_v21 }
 0x50f   : > { %v1528_v23 = vmul.f32 %v1837_v4, %v1526_v22  ;;  %v1525_v31 = vadd.f32 0.2548296, %v1523_v24 }
 0x511   : > { %v1538_v32 = vmul.f32 %v1841_v26, %v1528_v23  ;;  %v1527_v33 = vmul.f32 %v1839_v7, %v1525_v31 }
 0x513   : > { %v1676_v35 = vadd.f32 -1.0, %v1538_v32  ;;  %v1544_v36 = vsub.f32 1.0, %v1538_v32  ;;  %v1537_v37 = vmul.f32 %v1843_v34, %v1527_v33 }
 0x515   : > { %v1546_v38 = vsel %vm1540_vm2, %v1676_v35, %v1544_v36  ;;  %v1675_v39 = vadd.f32 -1.0, %v1537_v37  ;;  %v1543_v40 = vsub.f32 1.0, %v1537_v37 }
 0x516   : > { %v1548_v41 = vadd.f32 1.0, %v1546_v38 }
 0x517   : > { %v1545_v42 = vsel %vm1539_vm3, %v1675_v39, %v1543_v40 }
 0x518   : > { %v1547_v44 = vadd.f32 1.0, %v1545_v42  ;;  %v1550_v47 = vmul.f32 %v1548_v41, %v1498_v45 }
 0x51a   : > { %v1549_v46 = vmul.f32 %v1547_v44, %v1497_v43  ;;  %1552 = vst.msk [vmem:[%s290_s27 + $0x8] sm:$0xff] %vm524_vm1, %v1550_v47 }
 0x51c   : > { %1551 = vst.msk [vmem:[%s290_s27] sm:$0xff] %vm524_vm1, %v1549_v46 }
 0x51d PF: > { %s17_s21 = sadd.s32 1, %s1880_s21  }
 0x51e   : > { %p14_p1 = scmp.ge.s32.totalorder %s17_s21, 4  }
 0x520   :  { %16 = sbr.rel (!%p14_p1) target bundleno = 1 (0x1), region = 89 }
 0x525   :  { %1575 = vsyncpa [#allocation3], 1 }
 0x526   :  { %1577 = vsyncpa [#allocation3 + $0x1], 1 }

</bundles_post_ra>
